<compile_context>
chip_gen: v5e
topology: v5e:2x2
jax: 0.10.0
libtpu: 0.0.40
codegen_flags: <defaults>
</compile_context>

<pallas_src>
import jax
import jax.numpy as jnp
import numpy as np
from jax import lax
from jax.experimental import pallas as pl
from jax.experimental.pallas import tpu as pltpu

D_MODEL = 32
N_HEADS = 4
D_FF = 64
SEQ = 8
MEM_SEQ = 8
BATCH = 2
LN_EPS = 1e-5


# ---------------- shared math (used by both the kernel body and the pure-JAX reference) -----


def _mm(a, w):
    """bf16-operand matmul with f32 accumulation (MXU-native on v5e/v6e/v7x)."""
    return jnp.dot(a.astype(jnp.bfloat16), w.astype(jnp.bfloat16),
                   preferred_element_type=jnp.float32)


def _layernorm(x, gamma, beta):
    mean = jnp.mean(x, axis=-1, keepdims=True)
    var = jnp.mean((x - mean) ** 2, axis=-1, keepdims=True)
    return (x - mean) * lax.rsqrt(var + LN_EPS) * gamma + beta


def _attention(q, k, v, mask, n_heads, recip_fn):
    """q: (B,Sq,D), k/v: (B,Sk,D), mask: (B,Sq,Sk) with 1=keep. 1/sqrt(dk) pre-folded into q."""
    d = q.shape[-1]
    dk = d // n_heads
    # Additive mask bias computed ONCE per attention (hoisted out of the head loop).
    bias = jnp.where(mask > 0.0, 0.0, -1e9)
    outs = []
    for h in range(n_heads):
        qh = q[..., h * dk:(h + 1) * dk].astype(jnp.bfloat16)
        kh = k[..., h * dk:(h + 1) * dk].astype(jnp.bfloat16)
        vh = v[..., h * dk:(h + 1) * dk].astype(jnp.bfloat16)
        # (B,Sq,dk) x (B,Sk,dk) -> (B,Sq,Sk): contract last dims, batch over B (no .T needed).
        s = lax.dot_general(qh, kh, (((2,), (2,)), ((0,), (0,))),
                            preferred_element_type=jnp.float32)
        s = s + bias
        m = jnp.max(s, axis=-1, keepdims=True)
        p = jnp.exp(s - m)
        p = p * recip_fn(jnp.sum(p, axis=-1, keepdims=True))
        # (B,Sq,Sk) x (B,Sk,dk) -> (B,Sq,dk)
        outs.append(lax.dot_general(p.astype(jnp.bfloat16), vh,
                                    (((2,), (1,)), ((0,), (0,))),
                                    preferred_element_type=jnp.float32))
    return jnp.concatenate(outs, axis=-1)          # (B,Sq,D)


def _decoder_layer_math(x, mem, smask, tmask, wslab, w2, bslab, recip_fn):
    """x: (B*S, D), mem: (B*Sm, D), masks (B,S,S)/(B,S,Sm) with 1=keep.
    wslab: (D, 10*D) bf16 packed weights; w2: (D_FF, D) bf16; bslab: (13,128) f32 LN/biases."""
    B, S, _ = smask.shape
    Sm = tmask.shape[2]
    D = D_MODEL
    # ---- unpack the packed parameter slabs with static slices (no extra DMAs) ----
    w_cols = (3 * D, D, D, 2 * D, D, D_FF)
    ws, off = [], 0
    for n in w_cols:
        ws.append(wslab[:, off:off + n])
        off += n
    s_wqkv, s_wo, c_wq, c_wkv, c_wo, w1 = ws
    b_widths = (D, D, D, D, D, D, 3 * D, D, D, 2 * D, D, D_FF, D)
    (ln_g0, ln_b0, ln_g1, ln_b1, ln_g2, ln_b2,
     s_bqkv, s_bo, c_bq, c_bkv, c_bo, b1, b2) = [
        bslab[i:i + 1, :w] for i, w in enumerate(b_widths)]

    # Sublayer 1: pre-norm self-attention residual (module routes src_mask here).
    xn = _layernorm(x, ln_g0, ln_b0)
    qkv = (_mm(xn, s_wqkv) + s_bqkv).reshape(B, S, 3 * D)
    q, k, v = qkv[..., :D], qkv[..., D:2 * D], qkv[..., 2 * D:]
    ctx = _attention(q, k, v, smask, N_HEADS, recip_fn).reshape(B * S, D)
    x = x + _mm(ctx, s_wo) + s_bo
    # Sublayer 2: pre-norm cross-attention residual; K/V from raw memory (tgt_mask here).
    xn = _layernorm(x, ln_g1, ln_b1)
    q = (_mm(xn, c_wq) + c_bq).reshape(B, S, D)
    kv = (_mm(mem, c_wkv) + c_bkv).reshape(B, Sm, 2 * D)
    k, v = kv[..., :D], kv[..., D:]
    ctx = _attention(q, k, v, tmask, N_HEADS, recip_fn).reshape(B * S, D)
    x = x + _mm(ctx, c_wo) + c_bo
    # Sublayer 3: pre-norm position-wise feed-forward residual.
    xn = _layernorm(x, ln_g2, ln_b2)
    h = jnp.maximum(_mm(xn, w1) + b1, 0.0)
    x = x + _mm(h, w2) + b2
    return x


# ---------------- Pallas kernel --------------------------------------------------------------


def decoder_layer_kernel(x_ref, mem_ref, smask_ref, tmask_ref,
                         wslab_ref, w2_ref, bslab_ref, o_ref):
    o_ref[...] = _decoder_layer_math(
        x_ref[...], mem_ref[...], smask_ref[...], tmask_ref[...],
        wslab_ref[...], w2_ref[...], bslab_ref[...],
        recip_fn=lambda d: pl.reciprocal(d, approx=True))


def decoder_layer(x, memory, src_mask, tgt_mask, wslab, w2, bslab):
    B, S, D = x.shape
    Sm = memory.shape[1]
    x2 = x.reshape(B * S, D)          # fold batch into rows for all row-wise matmuls
    mem2 = memory.reshape(B * Sm, D)

    in_specs = [
        pl.BlockSpec((B * S, D), lambda i: (0, 0)),       # x (batch folded)   -- donated to out
        pl.BlockSpec((B * Sm, D), lambda i: (0, 0)),      # memory (batch folded)
        pl.BlockSpec((B, S, S), lambda i: (0, 0, 0)),     # src_mask (self-attn)
        pl.BlockSpec((B, S, Sm), lambda i: (0, 0, 0)),    # tgt_mask (cross-attn)
        pl.BlockSpec(wslab.shape, lambda i: (0, 0)),      # packed bf16 weight slab
        pl.BlockSpec(w2.shape, lambda i: (0, 0)),         # bf16 FFN second matmul
        pl.BlockSpec(bslab.shape, lambda i: (0, 0)),      # packed f32 LN/bias slab
    ]

    out2 = pl.pallas_call(
        decoder_layer_kernel,
        out_shape=jax.ShapeDtypeStruct((B * S, D), jnp.float32),
        grid_spec=pltpu.PrefetchScalarGridSpec(
            num_scalar_prefetch=0,
            grid=(1,),                                    # single step: fixed overhead paid once
            in_specs=in_specs,
            out_specs=pl.BlockSpec((B * S, D), lambda i: (0, 0)),
        ),
        compiler_params=pltpu.CompilerParams(
            dimension_semantics=("arbitrary",)),
        input_output_aliases={0: 0},                      # donate x2 buffer to the output
    )(x2, mem2, src_mask, tgt_mask, wslab, w2, bslab)
    return out2.reshape(B, S, D)


# ---------------- one-time parameter prep (hoisted out of the per-call path) ----------------


def prepare_params(params):
    """Fuse QKV/KV, fold 1/sqrt(dk) into Q, cast matmul weights to bf16, and pack everything
    into 3 DMA slabs. Called ONCE; the returned slabs are cached and reused every call."""
    ln_g, ln_b, sW, sb, cW, cb, w1, b1, w2, b2 = params
    dk = D_MODEL // N_HEADS
    scale = 1.0 / (dk ** 0.5)
    bf = jnp.bfloat16
    # (32, 320) bf16 weight slab: s_wqkv | s_wo | c_wq | c_wkv | c_wo | w1
    wslab = jnp.concatenate(
        [sW[0] * scale, sW[1], sW[2],     # fused self-attn QKV (Q pre-scaled)
         sW[3],                           # self-attn output projection
         cW[0] * scale,                   # cross-attn Q (pre-scaled)
         cW[1], cW[2],                    # fused cross-attn KV
         cW[3],                           # cross-attn output projection
         w1],                             # FFN first matmul
        axis=-1).astype(bf)
    w2b = w2.astype(bf)                   # (64, 32): different row count -> own slab
    # (13, 128) f32 LN/bias slab, one field per row (lane-aligned prefix slices in kernel)
    def row(v):
        v = v.reshape(1, -1)
        return jnp.pad(v, ((0, 0), (0, 128 - v.shape[1])))
    rows = [ln_g[0], ln_b[0], ln_g[1], ln_b[1], ln_g[2], ln_b[2],
            jnp.concatenate([sb[0] * scale, sb[1], sb[2]], axis=-1), sb[3],
            cb[0] * scale, jnp.concatenate([cb[1], cb[2]], axis=-1), cb[3],
            b1.reshape(-1), b2.reshape(-1)]
    bslab = jnp.concatenate([row(r) for r in rows], axis=0)   # (13, 128) f32
    return wslab, w2b, bslab


# ---------------- parameter init & driver ----------------------------------------------------


def init_params(key):
    ks = jax.random.split(key, 8)
    ln_g = jnp.ones((3, D_MODEL), jnp.float32)
    ln_b = jnp.zeros((3, D_MODEL), jnp.float32)
    sW = 0.05 * jax.random.normal(ks[0], (4, D_MODEL, D_MODEL), jnp.float32)
    sb = 0.01 * jax.random.normal(ks[1], (4, D_MODEL), jnp.float32)
    cW = 0.05 * jax.random.normal(ks[2], (4, D_MODEL, D_MODEL), jnp.float32)
    cb = 0.01 * jax.random.normal(ks[3], (4, D_MODEL), jnp.float32)
    w1 = 0.05 * jax.random.normal(ks[4], (D_MODEL, D_FF), jnp.float32)
    b1 = 0.01 * jax.random.normal(ks[5], (1, D_FF), jnp.float32)
    w2 = 0.05 * jax.random.normal(ks[6], (D_FF, D_MODEL), jnp.float32)
    b2 = 0.01 * jax.random.normal(ks[7], (1, D_MODEL), jnp.float32)
    return (ln_g, ln_b, sW, sb, cW, cb, w1, b1, w2, b2)


if __name__ == "__main__":
    key = jax.random.PRNGKey(0)
    k_x, k_m, k_p = jax.random.split(key, 3)

    x = jax.random.normal(k_x, (BATCH, SEQ, D_MODEL), jnp.float32)
    memory = jax.random.normal(k_m, (BATCH, MEM_SEQ, D_MODEL), jnp.float32)
    # Module routes src_mask to self-attention and tgt_mask to cross-attention (per the given
    # PyTorch forward), so the causal mask goes in src_mask here.
    src_mask = jnp.broadcast_to(
        jnp.tril(jnp.ones((SEQ, SEQ), jnp.float32)), (BATCH, SEQ, SEQ))
    tgt_mask = jnp.ones((BATCH, SEQ, MEM_SEQ), jnp.float32)

    params = init_params(k_p)
    # One-time weight prep ("cached"); per-call path only sees the prepped slabs.
    wslab, w2b, bslab = prepare_params(params)
    wslab, w2b, bslab = jax.block_until_ready((wslab, w2b, bslab))

    decoder = jax.jit(decoder_layer)
    out = decoder(x, memory, src_mask, tgt_mask, wslab, w2b, bslab)
    out = jax.block_until_ready(out)

    # Pure-JAX reference using the same math (exact reciprocal instead of EUP approx).
    ref = _decoder_layer_math(
        x.reshape(BATCH * SEQ, D_MODEL), memory.reshape(BATCH * MEM_SEQ, D_MODEL),
        src_mask, tgt_mask, wslab, w2b, bslab,
        recip_fn=lambda d: 1.0 / d).reshape(BATCH, SEQ, D_MODEL)
    np.testing.assert_allclose(np.asarray(out), np.asarray(ref), rtol=2e-2, atol=2e-2)

    # TODO(synk): dropout is modeled as identity (inference); stochastic dropout would need
    # pltpu.prng_seed / pltpu.stateful_bernoulli inside the kernel.
    print("KERNEL_OK")
</pallas_src>

<mosaic_0001>
module attributes {stable_mosaic.version = 11 : i64} {
  func.func @decoder_layer_kernel(%arg0: i32, %arg1: memref<16x32xf32, #tpu.memory_space<vmem>>, %arg2: memref<16x32xf32, #tpu.memory_space<vmem>>, %arg3: memref<2x8x8xf32, #tpu.memory_space<vmem>>, %arg4: memref<2x8x8xf32, #tpu.memory_space<vmem>>, %arg5: memref<32x320xbf16, #tpu.memory_space<vmem>>, %arg6: memref<64x32xbf16, #tpu.memory_space<vmem>>, %arg7: memref<13x128xf32, #tpu.memory_space<vmem>>, %arg8: memref<16x32xf32, #tpu.memory_space<vmem>>) attributes {dimension_semantics = [#tpu.dimension_semantics<arbitrary>], iteration_bounds = array<i64: 1>, scalar_prefetch = 0 : i64, scratch_operands = 0 : i64, tpu.core_type = #tpu.core_type<tc>, window_params = [{pipeline_mode = #tpu.pipeline_mode<synchronous>, transform_indices = @transform_0, window_bounds = array<i64: 16, 32>}, {pipeline_mode = #tpu.pipeline_mode<synchronous>, transform_indices = @transform_1, window_bounds = array<i64: 16, 32>}, {pipeline_mode = #tpu.pipeline_mode<synchronous>, transform_indices = @transform_2, window_bounds = array<i64: 2, 8, 8>}, {pipeline_mode = #tpu.pipeline_mode<synchronous>, transform_indices = @transform_3, window_bounds = array<i64: 2, 8, 8>}, {pipeline_mode = #tpu.pipeline_mode<synchronous>, transform_indices = @transform_4, window_bounds = array<i64: 32, 320>}, {pipeline_mode = #tpu.pipeline_mode<synchronous>, transform_indices = @transform_5, window_bounds = array<i64: 64, 32>}, {pipeline_mode = #tpu.pipeline_mode<synchronous>, transform_indices = @transform_6, window_bounds = array<i64: 13, 128>}, {pipeline_mode = #tpu.pipeline_mode<synchronous>, transform_indices = @transform_7, window_bounds = array<i64: 16, 32>}]} {
    %c0 = arith.constant 0 : index
    %c0_0 = arith.constant 0 : index
    %0 = vector.load %arg1[%c0, %c0_0] : memref<16x32xf32, #tpu.memory_space<vmem>>, vector<16x32xf32>
    %c0_1 = arith.constant 0 : index
    %c0_2 = arith.constant 0 : index
    %1 = vector.load %arg2[%c0_1, %c0_2] : memref<16x32xf32, #tpu.memory_space<vmem>>, vector<16x32xf32>
    %c0_3 = arith.constant 0 : index
    %c0_4 = arith.constant 0 : index
    %c0_5 = arith.constant 0 : index
    %2 = vector.load %arg3[%c0_3, %c0_4, %c0_5] : memref<2x8x8xf32, #tpu.memory_space<vmem>>, vector<2x8x8xf32>
    %c0_6 = arith.constant 0 : index
    %c0_7 = arith.constant 0 : index
    %c0_8 = arith.constant 0 : index
    %3 = vector.load %arg4[%c0_6, %c0_7, %c0_8] : memref<2x8x8xf32, #tpu.memory_space<vmem>>, vector<2x8x8xf32>
    %c0_9 = arith.constant 0 : index
    %c0_10 = arith.constant 0 : index
    %4 = vector.load %arg5[%c0_9, %c0_10] : memref<32x320xbf16, #tpu.memory_space<vmem>>, vector<32x320xbf16>
    %c0_11 = arith.constant 0 : index
    %c0_12 = arith.constant 0 : index
    %5 = vector.load %arg6[%c0_11, %c0_12] : memref<64x32xbf16, #tpu.memory_space<vmem>>, vector<64x32xbf16>
    %c0_13 = arith.constant 0 : index
    %c0_14 = arith.constant 0 : index
    %6 = vector.load %arg7[%c0_13, %c0_14] : memref<13x128xf32, #tpu.memory_space<vmem>>, vector<13x128xf32>
    %7 = vector.extract_strided_slice %4 {offsets = [0, 0], sizes = [32, 96], strides = [1, 1]} : vector<32x320xbf16> to vector<32x96xbf16>
    %8 = vector.extract_strided_slice %4 {offsets = [0, 96], sizes = [32, 32], strides = [1, 1]} : vector<32x320xbf16> to vector<32x32xbf16>
    %9 = vector.extract_strided_slice %4 {offsets = [0, 128], sizes = [32, 32], strides = [1, 1]} : vector<32x320xbf16> to vector<32x32xbf16>
    %10 = vector.extract_strided_slice %4 {offsets = [0, 160], sizes = [32, 64], strides = [1, 1]} : vector<32x320xbf16> to vector<32x64xbf16>
    %11 = vector.extract_strided_slice %4 {offsets = [0, 224], sizes = [32, 32], strides = [1, 1]} : vector<32x320xbf16> to vector<32x32xbf16>
    %12 = vector.extract_strided_slice %4 {offsets = [0, 256], sizes = [32, 64], strides = [1, 1]} : vector<32x320xbf16> to vector<32x64xbf16>
    %13 = vector.extract_strided_slice %6 {offsets = [0, 0], sizes = [1, 32], strides = [1, 1]} : vector<13x128xf32> to vector<1x32xf32>
    %14 = vector.extract_strided_slice %6 {offsets = [1, 0], sizes = [1, 32], strides = [1, 1]} : vector<13x128xf32> to vector<1x32xf32>
    %15 = vector.extract_strided_slice %6 {offsets = [2, 0], sizes = [1, 32], strides = [1, 1]} : vector<13x128xf32> to vector<1x32xf32>
    %16 = vector.extract_strided_slice %6 {offsets = [3, 0], sizes = [1, 32], strides = [1, 1]} : vector<13x128xf32> to vector<1x32xf32>
    %17 = vector.extract_strided_slice %6 {offsets = [4, 0], sizes = [1, 32], strides = [1, 1]} : vector<13x128xf32> to vector<1x32xf32>
    %18 = vector.extract_strided_slice %6 {offsets = [5, 0], sizes = [1, 32], strides = [1, 1]} : vector<13x128xf32> to vector<1x32xf32>
    %19 = vector.extract_strided_slice %6 {offsets = [6, 0], sizes = [1, 96], strides = [1, 1]} : vector<13x128xf32> to vector<1x96xf32>
    %20 = vector.extract_strided_slice %6 {offsets = [7, 0], sizes = [1, 32], strides = [1, 1]} : vector<13x128xf32> to vector<1x32xf32>
    %21 = vector.extract_strided_slice %6 {offsets = [8, 0], sizes = [1, 32], strides = [1, 1]} : vector<13x128xf32> to vector<1x32xf32>
    %22 = vector.extract_strided_slice %6 {offsets = [9, 0], sizes = [1, 64], strides = [1, 1]} : vector<13x128xf32> to vector<1x64xf32>
    %23 = vector.extract_strided_slice %6 {offsets = [10, 0], sizes = [1, 32], strides = [1, 1]} : vector<13x128xf32> to vector<1x32xf32>
    %24 = vector.extract_strided_slice %6 {offsets = [11, 0], sizes = [1, 64], strides = [1, 1]} : vector<13x128xf32> to vector<1x64xf32>
    %25 = vector.extract_strided_slice %6 {offsets = [12, 0], sizes = [1, 32], strides = [1, 1]} : vector<13x128xf32> to vector<1x32xf32>
    %cst = arith.constant dense<0.000000e+00> : vector<16xf32>
    %26 = vector.multi_reduction <add>, %0, %cst [1] : vector<16x32xf32> to vector<16xf32>
    %27 = vector.shape_cast %26 : vector<16xf32> to vector<16x1xf32>
    %cst_15 = arith.constant 3.200000e+01 : f32
    %28 = vector.broadcast %cst_15 : f32 to vector<16x1xf32>
    %29 = arith.divf %27, %28 : vector<16x1xf32>
    %30 = vector.broadcast %29 : vector<16x1xf32> to vector<16x32xf32>
    %31 = arith.subf %0, %30 : vector<16x32xf32>
    %32 = arith.mulf %31, %31 : vector<16x32xf32>
    %cst_16 = arith.constant dense<0.000000e+00> : vector<16xf32>
    %33 = vector.multi_reduction <add>, %32, %cst_16 [1] : vector<16x32xf32> to vector<16xf32>
    %34 = vector.shape_cast %33 : vector<16xf32> to vector<16x1xf32>
    %cst_17 = arith.constant 3.200000e+01 : f32
    %35 = vector.broadcast %cst_17 : f32 to vector<16x1xf32>
    %36 = arith.divf %34, %35 : vector<16x1xf32>
    %37 = vector.broadcast %29 : vector<16x1xf32> to vector<16x32xf32>
    %38 = arith.subf %0, %37 : vector<16x32xf32>
    %cst_18 = arith.constant 9.99999974E-6 : f32
    %39 = vector.broadcast %cst_18 : f32 to vector<16x1xf32>
    %40 = arith.addf %36, %39 : vector<16x1xf32>
    %41 = math.rsqrt %40 : vector<16x1xf32>
    %42 = vector.broadcast %41 : vector<16x1xf32> to vector<16x32xf32>
    %43 = arith.mulf %38, %42 : vector<16x32xf32>
    %44 = vector.broadcast %13 : vector<1x32xf32> to vector<16x32xf32>
    %45 = arith.mulf %43, %44 : vector<16x32xf32>
    %46 = vector.broadcast %14 : vector<1x32xf32> to vector<16x32xf32>
    %47 = arith.addf %45, %46 : vector<16x32xf32>
    %48 = arith.truncf %47 : vector<16x32xf32> to vector<16x32xbf16>
    %cst_19 = arith.constant dense<0.000000e+00> : vector<16x96xf32>
    %49 = tpu.matmul %48, %7, %cst_19 {dimension_numbers = #tpu.dot_dimension_numbers<[1], [0], [0], [1], [0, 0, 1, 1], [], []>} : vector<16x32xbf16>, vector<32x96xbf16>, vector<16x96xf32> -> vector<16x96xf32>
    %50 = vector.broadcast %19 : vector<1x96xf32> to vector<16x96xf32>
    %51 = arith.addf %49, %50 : vector<16x96xf32>
    %52 = vector.shape_cast %51 : vector<16x96xf32> to vector<2x8x96xf32>
    %53 = vector.extract_strided_slice %52 {offsets = [0, 0, 0], sizes = [2, 8, 32], strides = [1, 1, 1]} : vector<2x8x96xf32> to vector<2x8x32xf32>
    %54 = vector.extract_strided_slice %52 {offsets = [0, 0, 32], sizes = [2, 8, 32], strides = [1, 1, 1]} : vector<2x8x96xf32> to vector<2x8x32xf32>
    %55 = vector.extract_strided_slice %52 {offsets = [0, 0, 64], sizes = [2, 8, 32], strides = [1, 1, 1]} : vector<2x8x96xf32> to vector<2x8x32xf32>
    %cst_20 = arith.constant 0.000000e+00 : f32
    %56 = vector.broadcast %cst_20 : f32 to vector<2x8x8xf32>
    %57 = arith.cmpf ogt, %2, %56 : vector<2x8x8xf32>
    %cst_21 = arith.constant 0.000000e+00 : f32
    %cst_22 = arith.constant -1.000000e+09 : f32
    %58 = vector.broadcast %cst_21 : f32 to vector<2x8x8xf32>
    %59 = vector.broadcast %cst_22 : f32 to vector<2x8x8xf32>
    %60 = arith.select %57, %58, %59 : vector<2x8x8xi1>, vector<2x8x8xf32>
    %61 = vector.extract_strided_slice %53 {offsets = [0, 0, 0], sizes = [2, 8, 8], strides = [1, 1, 1]} : vector<2x8x32xf32> to vector<2x8x8xf32>
    %62 = arith.truncf %61 : vector<2x8x8xf32> to vector<2x8x8xbf16>
    %63 = vector.extract_strided_slice %54 {offsets = [0, 0, 0], sizes = [2, 8, 8], strides = [1, 1, 1]} : vector<2x8x32xf32> to vector<2x8x8xf32>
    %64 = arith.truncf %63 : vector<2x8x8xf32> to vector<2x8x8xbf16>
    %65 = vector.extract_strided_slice %55 {offsets = [0, 0, 0], sizes = [2, 8, 8], strides = [1, 1, 1]} : vector<2x8x32xf32> to vector<2x8x8xf32>
    %66 = arith.truncf %65 : vector<2x8x8xf32> to vector<2x8x8xbf16>
    %cst_23 = arith.constant dense<0.000000e+00> : vector<2x8x8xf32>
    %67 = tpu.matmul %62, %64, %cst_23 {dimension_numbers = #tpu.dot_dimension_numbers<[2], [2], [1], [1], [0, 0, 0, 1, 1, 1], [0], [0]>} : vector<2x8x8xbf16>, vector<2x8x8xbf16>, vector<2x8x8xf32> -> vector<2x8x8xf32>
    %68 = arith.addf %67, %60 : vector<2x8x8xf32>
    %cst_24 = arith.constant dense<0xFF800000> : vector<2x8xf32>
    %69 = vector.multi_reduction <maximumf>, %68, %cst_24 [2] : vector<2x8x8xf32> to vector<2x8xf32>
    %70 = vector.shape_cast %69 : vector<2x8xf32> to vector<2x8x1xf32>
    %71 = vector.broadcast %70 : vector<2x8x1xf32> to vector<2x8x8xf32>
    %72 = arith.subf %68, %71 : vector<2x8x8xf32>
    %73 = math.exp %72 : vector<2x8x8xf32>
    %cst_25 = arith.constant dense<0.000000e+00> : vector<2x8xf32>
    %74 = vector.multi_reduction <add>, %73, %cst_25 [2] : vector<2x8x8xf32> to vector<2x8xf32>
    %75 = vector.shape_cast %74 : vector<2x8xf32> to vector<2x8x1xf32>
    %76 = tpu.reciprocal %75 {approx = true} : vector<2x8x1xf32> -> vector<2x8x1xf32>
    %77 = vector.broadcast %76 : vector<2x8x1xf32> to vector<2x8x8xf32>
    %78 = arith.mulf %73, %77 : vector<2x8x8xf32>
    %79 = arith.truncf %78 : vector<2x8x8xf32> to vector<2x8x8xbf16>
    %cst_26 = arith.constant dense<0.000000e+00> : vector<2x8x8xf32>
    %80 = tpu.matmul %79, %66, %cst_26 {dimension_numbers = #tpu.dot_dimension_numbers<[2], [1], [1], [2], [0, 0, 0, 1, 1, 2], [0], [0]>} : vector<2x8x8xbf16>, vector<2x8x8xbf16>, vector<2x8x8xf32> -> vector<2x8x8xf32>
    %81 = vector.extract_strided_slice %53 {offsets = [0, 0, 8], sizes = [2, 8, 8], strides = [1, 1, 1]} : vector<2x8x32xf32> to vector<2x8x8xf32>
    %82 = arith.truncf %81 : vector<2x8x8xf32> to vector<2x8x8xbf16>
    %83 = vector.extract_strided_slice %54 {offsets = [0, 0, 8], sizes = [2, 8, 8], strides = [1, 1, 1]} : vector<2x8x32xf32> to vector<2x8x8xf32>
    %84 = arith.truncf %83 : vector<2x8x8xf32> to vector<2x8x8xbf16>
    %85 = vector.extract_strided_slice %55 {offsets = [0, 0, 8], sizes = [2, 8, 8], strides = [1, 1, 1]} : vector<2x8x32xf32> to vector<2x8x8xf32>
    %86 = arith.truncf %85 : vector<2x8x8xf32> to vector<2x8x8xbf16>
    %cst_27 = arith.constant dense<0.000000e+00> : vector<2x8x8xf32>
    %87 = tpu.matmul %82, %84, %cst_27 {dimension_numbers = #tpu.dot_dimension_numbers<[2], [2], [1], [1], [0, 0, 0, 1, 1, 1], [0], [0]>} : vector<2x8x8xbf16>, vector<2x8x8xbf16>, vector<2x8x8xf32> -> vector<2x8x8xf32>
    %88 = arith.addf %87, %60 : vector<2x8x8xf32>
    %cst_28 = arith.constant dense<0xFF800000> : vector<2x8xf32>
    %89 = vector.multi_reduction <maximumf>, %88, %cst_28 [2] : vector<2x8x8xf32> to vector<2x8xf32>
    %90 = vector.shape_cast %89 : vector<2x8xf32> to vector<2x8x1xf32>
    %91 = vector.broadcast %90 : vector<2x8x1xf32> to vector<2x8x8xf32>
    %92 = arith.subf %88, %91 : vector<2x8x8xf32>
    %93 = math.exp %92 : vector<2x8x8xf32>
    %cst_29 = arith.constant dense<0.000000e+00> : vector<2x8xf32>
    %94 = vector.multi_reduction <add>, %93, %cst_29 [2] : vector<2x8x8xf32> to vector<2x8xf32>
    %95 = vector.shape_cast %94 : vector<2x8xf32> to vector<2x8x1xf32>
    %96 = tpu.reciprocal %95 {approx = true} : vector<2x8x1xf32> -> vector<2x8x1xf32>
    %97 = vector.broadcast %96 : vector<2x8x1xf32> to vector<2x8x8xf32>
    %98 = arith.mulf %93, %97 : vector<2x8x8xf32>
    %99 = arith.truncf %98 : vector<2x8x8xf32> to vector<2x8x8xbf16>
    %cst_30 = arith.constant dense<0.000000e+00> : vector<2x8x8xf32>
    %100 = tpu.matmul %99, %86, %cst_30 {dimension_numbers = #tpu.dot_dimension_numbers<[2], [1], [1], [2], [0, 0, 0, 1, 1, 2], [0], [0]>} : vector<2x8x8xbf16>, vector<2x8x8xbf16>, vector<2x8x8xf32> -> vector<2x8x8xf32>
    %101 = vector.extract_strided_slice %53 {offsets = [0, 0, 16], sizes = [2, 8, 8], strides = [1, 1, 1]} : vector<2x8x32xf32> to vector<2x8x8xf32>
    %102 = arith.truncf %101 : vector<2x8x8xf32> to vector<2x8x8xbf16>
    %103 = vector.extract_strided_slice %54 {offsets = [0, 0, 16], sizes = [2, 8, 8], strides = [1, 1, 1]} : vector<2x8x32xf32> to vector<2x8x8xf32>
    %104 = arith.truncf %103 : vector<2x8x8xf32> to vector<2x8x8xbf16>
    %105 = vector.extract_strided_slice %55 {offsets = [0, 0, 16], sizes = [2, 8, 8], strides = [1, 1, 1]} : vector<2x8x32xf32> to vector<2x8x8xf32>
    %106 = arith.truncf %105 : vector<2x8x8xf32> to vector<2x8x8xbf16>
    %cst_31 = arith.constant dense<0.000000e+00> : vector<2x8x8xf32>
    %107 = tpu.matmul %102, %104, %cst_31 {dimension_numbers = #tpu.dot_dimension_numbers<[2], [2], [1], [1], [0, 0, 0, 1, 1, 1], [0], [0]>} : vector<2x8x8xbf16>, vector<2x8x8xbf16>, vector<2x8x8xf32> -> vector<2x8x8xf32>
    %108 = arith.addf %107, %60 : vector<2x8x8xf32>
    %cst_32 = arith.constant dense<0xFF800000> : vector<2x8xf32>
    %109 = vector.multi_reduction <maximumf>, %108, %cst_32 [2] : vector<2x8x8xf32> to vector<2x8xf32>
    %110 = vector.shape_cast %109 : vector<2x8xf32> to vector<2x8x1xf32>
    %111 = vector.broadcast %110 : vector<2x8x1xf32> to vector<2x8x8xf32>
    %112 = arith.subf %108, %111 : vector<2x8x8xf32>
    %113 = math.exp %112 : vector<2x8x8xf32>
    %cst_33 = arith.constant dense<0.000000e+00> : vector<2x8xf32>
    %114 = vector.multi_reduction <add>, %113, %cst_33 [2] : vector<2x8x8xf32> to vector<2x8xf32>
    %115 = vector.shape_cast %114 : vector<2x8xf32> to vector<2x8x1xf32>
    %116 = tpu.reciprocal %115 {approx = true} : vector<2x8x1xf32> -> vector<2x8x1xf32>
    %117 = vector.broadcast %116 : vector<2x8x1xf32> to vector<2x8x8xf32>
    %118 = arith.mulf %113, %117 : vector<2x8x8xf32>
    %119 = arith.truncf %118 : vector<2x8x8xf32> to vector<2x8x8xbf16>
    %cst_34 = arith.constant dense<0.000000e+00> : vector<2x8x8xf32>
    %120 = tpu.matmul %119, %106, %cst_34 {dimension_numbers = #tpu.dot_dimension_numbers<[2], [1], [1], [2], [0, 0, 0, 1, 1, 2], [0], [0]>} : vector<2x8x8xbf16>, vector<2x8x8xbf16>, vector<2x8x8xf32> -> vector<2x8x8xf32>
    %121 = vector.extract_strided_slice %53 {offsets = [0, 0, 24], sizes = [2, 8, 8], strides = [1, 1, 1]} : vector<2x8x32xf32> to vector<2x8x8xf32>
    %122 = arith.truncf %121 : vector<2x8x8xf32> to vector<2x8x8xbf16>
    %123 = vector.extract_strided_slice %54 {offsets = [0, 0, 24], sizes = [2, 8, 8], strides = [1, 1, 1]} : vector<2x8x32xf32> to vector<2x8x8xf32>
    %124 = arith.truncf %123 : vector<2x8x8xf32> to vector<2x8x8xbf16>
    %125 = vector.extract_strided_slice %55 {offsets = [0, 0, 24], sizes = [2, 8, 8], strides = [1, 1, 1]} : vector<2x8x32xf32> to vector<2x8x8xf32>
    %126 = arith.truncf %125 : vector<2x8x8xf32> to vector<2x8x8xbf16>
    %cst_35 = arith.constant dense<0.000000e+00> : vector<2x8x8xf32>
    %127 = tpu.matmul %122, %124, %cst_35 {dimension_numbers = #tpu.dot_dimension_numbers<[2], [2], [1], [1], [0, 0, 0, 1, 1, 1], [0], [0]>} : vector<2x8x8xbf16>, vector<2x8x8xbf16>, vector<2x8x8xf32> -> vector<2x8x8xf32>
    %128 = arith.addf %127, %60 : vector<2x8x8xf32>
    %cst_36 = arith.constant dense<0xFF800000> : vector<2x8xf32>
    %129 = vector.multi_reduction <maximumf>, %128, %cst_36 [2] : vector<2x8x8xf32> to vector<2x8xf32>
    %130 = vector.shape_cast %129 : vector<2x8xf32> to vector<2x8x1xf32>
    %131 = vector.broadcast %130 : vector<2x8x1xf32> to vector<2x8x8xf32>
    %132 = arith.subf %128, %131 : vector<2x8x8xf32>
    %133 = math.exp %132 : vector<2x8x8xf32>
    %cst_37 = arith.constant dense<0.000000e+00> : vector<2x8xf32>
    %134 = vector.multi_reduction <add>, %133, %cst_37 [2] : vector<2x8x8xf32> to vector<2x8xf32>
    %135 = vector.shape_cast %134 : vector<2x8xf32> to vector<2x8x1xf32>
    %136 = tpu.reciprocal %135 {approx = true} : vector<2x8x1xf32> -> vector<2x8x1xf32>
    %137 = vector.broadcast %136 : vector<2x8x1xf32> to vector<2x8x8xf32>
    %138 = arith.mulf %133, %137 : vector<2x8x8xf32>
    %139 = arith.truncf %138 : vector<2x8x8xf32> to vector<2x8x8xbf16>
    %cst_38 = arith.constant dense<0.000000e+00> : vector<2x8x8xf32>
    %140 = tpu.matmul %139, %126, %cst_38 {dimension_numbers = #tpu.dot_dimension_numbers<[2], [1], [1], [2], [0, 0, 0, 1, 1, 2], [0], [0]>} : vector<2x8x8xbf16>, vector<2x8x8xbf16>, vector<2x8x8xf32> -> vector<2x8x8xf32>
    %141 = tpu.concatenate %80, %100, %120, %140 in 2 : vector<2x8x8xf32>, vector<2x8x8xf32>, vector<2x8x8xf32>, vector<2x8x8xf32> -> vector<2x8x32xf32>
    %142 = vector.shape_cast %141 : vector<2x8x32xf32> to vector<16x32xf32>
    %143 = arith.truncf %142 : vector<16x32xf32> to vector<16x32xbf16>
    %cst_39 = arith.constant dense<0.000000e+00> : vector<16x32xf32>
    %144 = tpu.matmul %143, %8, %cst_39 {dimension_numbers = #tpu.dot_dimension_numbers<[1], [0], [0], [1], [0, 0, 1, 1], [], []>} : vector<16x32xbf16>, vector<32x32xbf16>, vector<16x32xf32> -> vector<16x32xf32>
    %145 = arith.addf %0, %144 : vector<16x32xf32>
    %146 = vector.broadcast %20 : vector<1x32xf32> to vector<16x32xf32>
    %147 = arith.addf %145, %146 : vector<16x32xf32>
    %cst_40 = arith.constant dense<0.000000e+00> : vector<16xf32>
    %148 = vector.multi_reduction <add>, %147, %cst_40 [1] : vector<16x32xf32> to vector<16xf32>
    %149 = vector.shape_cast %148 : vector<16xf32> to vector<16x1xf32>
    %cst_41 = arith.constant 3.200000e+01 : f32
    %150 = vector.broadcast %cst_41 : f32 to vector<16x1xf32>
    %151 = arith.divf %149, %150 : vector<16x1xf32>
    %152 = vector.broadcast %151 : vector<16x1xf32> to vector<16x32xf32>
    %153 = arith.subf %147, %152 : vector<16x32xf32>
    %154 = arith.mulf %153, %153 : vector<16x32xf32>
    %cst_42 = arith.constant dense<0.000000e+00> : vector<16xf32>
    %155 = vector.multi_reduction <add>, %154, %cst_42 [1] : vector<16x32xf32> to vector<16xf32>
    %156 = vector.shape_cast %155 : vector<16xf32> to vector<16x1xf32>
    %cst_43 = arith.constant 3.200000e+01 : f32
    %157 = vector.broadcast %cst_43 : f32 to vector<16x1xf32>
    %158 = arith.divf %156, %157 : vector<16x1xf32>
    %159 = vector.broadcast %151 : vector<16x1xf32> to vector<16x32xf32>
    %160 = arith.subf %147, %159 : vector<16x32xf32>
    %cst_44 = arith.constant 9.99999974E-6 : f32
    %161 = vector.broadcast %cst_44 : f32 to vector<16x1xf32>
    %162 = arith.addf %158, %161 : vector<16x1xf32>
    %163 = math.rsqrt %162 : vector<16x1xf32>
    %164 = vector.broadcast %163 : vector<16x1xf32> to vector<16x32xf32>
    %165 = arith.mulf %160, %164 : vector<16x32xf32>
    %166 = vector.broadcast %15 : vector<1x32xf32> to vector<16x32xf32>
    %167 = arith.mulf %165, %166 : vector<16x32xf32>
    %168 = vector.broadcast %16 : vector<1x32xf32> to vector<16x32xf32>
    %169 = arith.addf %167, %168 : vector<16x32xf32>
    %170 = arith.truncf %169 : vector<16x32xf32> to vector<16x32xbf16>
    %cst_45 = arith.constant dense<0.000000e+00> : vector<16x32xf32>
    %171 = tpu.matmul %170, %9, %cst_45 {dimension_numbers = #tpu.dot_dimension_numbers<[1], [0], [0], [1], [0, 0, 1, 1], [], []>} : vector<16x32xbf16>, vector<32x32xbf16>, vector<16x32xf32> -> vector<16x32xf32>
    %172 = vector.broadcast %21 : vector<1x32xf32> to vector<16x32xf32>
    %173 = arith.addf %171, %172 : vector<16x32xf32>
    %174 = vector.shape_cast %173 : vector<16x32xf32> to vector<2x8x32xf32>
    %175 = arith.truncf %1 : vector<16x32xf32> to vector<16x32xbf16>
    %cst_46 = arith.constant dense<0.000000e+00> : vector<16x64xf32>
    %176 = tpu.matmul %175, %10, %cst_46 {dimension_numbers = #tpu.dot_dimension_numbers<[1], [0], [0], [1], [0, 0, 1, 1], [], []>} : vector<16x32xbf16>, vector<32x64xbf16>, vector<16x64xf32> -> vector<16x64xf32>
    %177 = vector.broadcast %22 : vector<1x64xf32> to vector<16x64xf32>
    %178 = arith.addf %176, %177 : vector<16x64xf32>
    %179 = vector.shape_cast %178 : vector<16x64xf32> to vector<2x8x64xf32>
    %180 = vector.extract_strided_slice %179 {offsets = [0, 0, 0], sizes = [2, 8, 32], strides = [1, 1, 1]} : vector<2x8x64xf32> to vector<2x8x32xf32>
    %181 = vector.extract_strided_slice %179 {offsets = [0, 0, 32], sizes = [2, 8, 32], strides = [1, 1, 1]} : vector<2x8x64xf32> to vector<2x8x32xf32>
    %cst_47 = arith.constant 0.000000e+00 : f32
    %182 = vector.broadcast %cst_47 : f32 to vector<2x8x8xf32>
    %183 = arith.cmpf ogt, %3, %182 : vector<2x8x8xf32>
    %cst_48 = arith.constant 0.000000e+00 : f32
    %cst_49 = arith.constant -1.000000e+09 : f32
    %184 = vector.broadcast %cst_48 : f32 to vector<2x8x8xf32>
    %185 = vector.broadcast %cst_49 : f32 to vector<2x8x8xf32>
    %186 = arith.select %183, %184, %185 : vector<2x8x8xi1>, vector<2x8x8xf32>
    %187 = vector.extract_strided_slice %174 {offsets = [0, 0, 0], sizes = [2, 8, 8], strides = [1, 1, 1]} : vector<2x8x32xf32> to vector<2x8x8xf32>
    %188 = arith.truncf %187 : vector<2x8x8xf32> to vector<2x8x8xbf16>
    %189 = vector.extract_strided_slice %180 {offsets = [0, 0, 0], sizes = [2, 8, 8], strides = [1, 1, 1]} : vector<2x8x32xf32> to vector<2x8x8xf32>
    %190 = arith.truncf %189 : vector<2x8x8xf32> to vector<2x8x8xbf16>
    %191 = vector.extract_strided_slice %181 {offsets = [0, 0, 0], sizes = [2, 8, 8], strides = [1, 1, 1]} : vector<2x8x32xf32> to vector<2x8x8xf32>
    %192 = arith.truncf %191 : vector<2x8x8xf32> to vector<2x8x8xbf16>
    %cst_50 = arith.constant dense<0.000000e+00> : vector<2x8x8xf32>
    %193 = tpu.matmul %188, %190, %cst_50 {dimension_numbers = #tpu.dot_dimension_numbers<[2], [2], [1], [1], [0, 0, 0, 1, 1, 1], [0], [0]>} : vector<2x8x8xbf16>, vector<2x8x8xbf16>, vector<2x8x8xf32> -> vector<2x8x8xf32>
    %194 = arith.addf %193, %186 : vector<2x8x8xf32>
    %cst_51 = arith.constant dense<0xFF800000> : vector<2x8xf32>
    %195 = vector.multi_reduction <maximumf>, %194, %cst_51 [2] : vector<2x8x8xf32> to vector<2x8xf32>
    %196 = vector.shape_cast %195 : vector<2x8xf32> to vector<2x8x1xf32>
    %197 = vector.broadcast %196 : vector<2x8x1xf32> to vector<2x8x8xf32>
    %198 = arith.subf %194, %197 : vector<2x8x8xf32>
    %199 = math.exp %198 : vector<2x8x8xf32>
    %cst_52 = arith.constant dense<0.000000e+00> : vector<2x8xf32>
    %200 = vector.multi_reduction <add>, %199, %cst_52 [2] : vector<2x8x8xf32> to vector<2x8xf32>
    %201 = vector.shape_cast %200 : vector<2x8xf32> to vector<2x8x1xf32>
    %202 = tpu.reciprocal %201 {approx = true} : vector<2x8x1xf32> -> vector<2x8x1xf32>
    %203 = vector.broadcast %202 : vector<2x8x1xf32> to vector<2x8x8xf32>
    %204 = arith.mulf %199, %203 : vector<2x8x8xf32>
    %205 = arith.truncf %204 : vector<2x8x8xf32> to vector<2x8x8xbf16>
    %cst_53 = arith.constant dense<0.000000e+00> : vector<2x8x8xf32>
    %206 = tpu.matmul %205, %192, %cst_53 {dimension_numbers = #tpu.dot_dimension_numbers<[2], [1], [1], [2], [0, 0, 0, 1, 1, 2], [0], [0]>} : vector<2x8x8xbf16>, vector<2x8x8xbf16>, vector<2x8x8xf32> -> vector<2x8x8xf32>
    %207 = vector.extract_strided_slice %174 {offsets = [0, 0, 8], sizes = [2, 8, 8], strides = [1, 1, 1]} : vector<2x8x32xf32> to vector<2x8x8xf32>
    %208 = arith.truncf %207 : vector<2x8x8xf32> to vector<2x8x8xbf16>
    %209 = vector.extract_strided_slice %180 {offsets = [0, 0, 8], sizes = [2, 8, 8], strides = [1, 1, 1]} : vector<2x8x32xf32> to vector<2x8x8xf32>
    %210 = arith.truncf %209 : vector<2x8x8xf32> to vector<2x8x8xbf16>
    %211 = vector.extract_strided_slice %181 {offsets = [0, 0, 8], sizes = [2, 8, 8], strides = [1, 1, 1]} : vector<2x8x32xf32> to vector<2x8x8xf32>
    %212 = arith.truncf %211 : vector<2x8x8xf32> to vector<2x8x8xbf16>
    %cst_54 = arith.constant dense<0.000000e+00> : vector<2x8x8xf32>
    %213 = tpu.matmul %208, %210, %cst_54 {dimension_numbers = #tpu.dot_dimension_numbers<[2], [2], [1], [1], [0, 0, 0, 1, 1, 1], [0], [0]>} : vector<2x8x8xbf16>, vector<2x8x8xbf16>, vector<2x8x8xf32> -> vector<2x8x8xf32>
    %214 = arith.addf %213, %186 : vector<2x8x8xf32>
    %cst_55 = arith.constant dense<0xFF800000> : vector<2x8xf32>
    %215 = vector.multi_reduction <maximumf>, %214, %cst_55 [2] : vector<2x8x8xf32> to vector<2x8xf32>
    %216 = vector.shape_cast %215 : vector<2x8xf32> to vector<2x8x1xf32>
    %217 = vector.broadcast %216 : vector<2x8x1xf32> to vector<2x8x8xf32>
    %218 = arith.subf %214, %217 : vector<2x8x8xf32>
    %219 = math.exp %218 : vector<2x8x8xf32>
    %cst_56 = arith.constant dense<0.000000e+00> : vector<2x8xf32>
    %220 = vector.multi_reduction <add>, %219, %cst_56 [2] : vector<2x8x8xf32> to vector<2x8xf32>
    %221 = vector.shape_cast %220 : vector<2x8xf32> to vector<2x8x1xf32>
    %222 = tpu.reciprocal %221 {approx = true} : vector<2x8x1xf32> -> vector<2x8x1xf32>
    %223 = vector.broadcast %222 : vector<2x8x1xf32> to vector<2x8x8xf32>
    %224 = arith.mulf %219, %223 : vector<2x8x8xf32>
    %225 = arith.truncf %224 : vector<2x8x8xf32> to vector<2x8x8xbf16>
    %cst_57 = arith.constant dense<0.000000e+00> : vector<2x8x8xf32>
    %226 = tpu.matmul %225, %212, %cst_57 {dimension_numbers = #tpu.dot_dimension_numbers<[2], [1], [1], [2], [0, 0, 0, 1, 1, 2], [0], [0]>} : vector<2x8x8xbf16>, vector<2x8x8xbf16>, vector<2x8x8xf32> -> vector<2x8x8xf32>
    %227 = vector.extract_strided_slice %174 {offsets = [0, 0, 16], sizes = [2, 8, 8], strides = [1, 1, 1]} : vector<2x8x32xf32> to vector<2x8x8xf32>
    %228 = arith.truncf %227 : vector<2x8x8xf32> to vector<2x8x8xbf16>
    %229 = vector.extract_strided_slice %180 {offsets = [0, 0, 16], sizes = [2, 8, 8], strides = [1, 1, 1]} : vector<2x8x32xf32> to vector<2x8x8xf32>
    %230 = arith.truncf %229 : vector<2x8x8xf32> to vector<2x8x8xbf16>
    %231 = vector.extract_strided_slice %181 {offsets = [0, 0, 16], sizes = [2, 8, 8], strides = [1, 1, 1]} : vector<2x8x32xf32> to vector<2x8x8xf32>
    %232 = arith.truncf %231 : vector<2x8x8xf32> to vector<2x8x8xbf16>
    %cst_58 = arith.constant dense<0.000000e+00> : vector<2x8x8xf32>
    %233 = tpu.matmul %228, %230, %cst_58 {dimension_numbers = #tpu.dot_dimension_numbers<[2], [2], [1], [1], [0, 0, 0, 1, 1, 1], [0], [0]>} : vector<2x8x8xbf16>, vector<2x8x8xbf16>, vector<2x8x8xf32> -> vector<2x8x8xf32>
    %234 = arith.addf %233, %186 : vector<2x8x8xf32>
    %cst_59 = arith.constant dense<0xFF800000> : vector<2x8xf32>
    %235 = vector.multi_reduction <maximumf>, %234, %cst_59 [2] : vector<2x8x8xf32> to vector<2x8xf32>
    %236 = vector.shape_cast %235 : vector<2x8xf32> to vector<2x8x1xf32>
    %237 = vector.broadcast %236 : vector<2x8x1xf32> to vector<2x8x8xf32>
    %238 = arith.subf %234, %237 : vector<2x8x8xf32>
    %239 = math.exp %238 : vector<2x8x8xf32>
    %cst_60 = arith.constant dense<0.000000e+00> : vector<2x8xf32>
    %240 = vector.multi_reduction <add>, %239, %cst_60 [2] : vector<2x8x8xf32> to vector<2x8xf32>
    %241 = vector.shape_cast %240 : vector<2x8xf32> to vector<2x8x1xf32>
    %242 = tpu.reciprocal %241 {approx = true} : vector<2x8x1xf32> -> vector<2x8x1xf32>
    %243 = vector.broadcast %242 : vector<2x8x1xf32> to vector<2x8x8xf32>
    %244 = arith.mulf %239, %243 : vector<2x8x8xf32>
    %245 = arith.truncf %244 : vector<2x8x8xf32> to vector<2x8x8xbf16>
    %cst_61 = arith.constant dense<0.000000e+00> : vector<2x8x8xf32>
    %246 = tpu.matmul %245, %232, %cst_61 {dimension_numbers = #tpu.dot_dimension_numbers<[2], [1], [1], [2], [0, 0, 0, 1, 1, 2], [0], [0]>} : vector<2x8x8xbf16>, vector<2x8x8xbf16>, vector<2x8x8xf32> -> vector<2x8x8xf32>
    %247 = vector.extract_strided_slice %174 {offsets = [0, 0, 24], sizes = [2, 8, 8], strides = [1, 1, 1]} : vector<2x8x32xf32> to vector<2x8x8xf32>
    %248 = arith.truncf %247 : vector<2x8x8xf32> to vector<2x8x8xbf16>
    %249 = vector.extract_strided_slice %180 {offsets = [0, 0, 24], sizes = [2, 8, 8], strides = [1, 1, 1]} : vector<2x8x32xf32> to vector<2x8x8xf32>
    %250 = arith.truncf %249 : vector<2x8x8xf32> to vector<2x8x8xbf16>
    %251 = vector.extract_strided_slice %181 {offsets = [0, 0, 24], sizes = [2, 8, 8], strides = [1, 1, 1]} : vector<2x8x32xf32> to vector<2x8x8xf32>
    %252 = arith.truncf %251 : vector<2x8x8xf32> to vector<2x8x8xbf16>
    %cst_62 = arith.constant dense<0.000000e+00> : vector<2x8x8xf32>
    %253 = tpu.matmul %248, %250, %cst_62 {dimension_numbers = #tpu.dot_dimension_numbers<[2], [2], [1], [1], [0, 0, 0, 1, 1, 1], [0], [0]>} : vector<2x8x8xbf16>, vector<2x8x8xbf16>, vector<2x8x8xf32> -> vector<2x8x8xf32>
    %254 = arith.addf %253, %186 : vector<2x8x8xf32>
    %cst_63 = arith.constant dense<0xFF800000> : vector<2x8xf32>
    %255 = vector.multi_reduction <maximumf>, %254, %cst_63 [2] : vector<2x8x8xf32> to vector<2x8xf32>
    %256 = vector.shape_cast %255 : vector<2x8xf32> to vector<2x8x1xf32>
    %257 = vector.broadcast %256 : vector<2x8x1xf32> to vector<2x8x8xf32>
    %258 = arith.subf %254, %257 : vector<2x8x8xf32>
    %259 = math.exp %258 : vector<2x8x8xf32>
    %cst_64 = arith.constant dense<0.000000e+00> : vector<2x8xf32>
    %260 = vector.multi_reduction <add>, %259, %cst_64 [2] : vector<2x8x8xf32> to vector<2x8xf32>
    %261 = vector.shape_cast %260 : vector<2x8xf32> to vector<2x8x1xf32>
    %262 = tpu.reciprocal %261 {approx = true} : vector<2x8x1xf32> -> vector<2x8x1xf32>
    %263 = vector.broadcast %262 : vector<2x8x1xf32> to vector<2x8x8xf32>
    %264 = arith.mulf %259, %263 : vector<2x8x8xf32>
    %265 = arith.truncf %264 : vector<2x8x8xf32> to vector<2x8x8xbf16>
    %cst_65 = arith.constant dense<0.000000e+00> : vector<2x8x8xf32>
    %266 = tpu.matmul %265, %252, %cst_65 {dimension_numbers = #tpu.dot_dimension_numbers<[2], [1], [1], [2], [0, 0, 0, 1, 1, 2], [0], [0]>} : vector<2x8x8xbf16>, vector<2x8x8xbf16>, vector<2x8x8xf32> -> vector<2x8x8xf32>
    %267 = tpu.concatenate %206, %226, %246, %266 in 2 : vector<2x8x8xf32>, vector<2x8x8xf32>, vector<2x8x8xf32>, vector<2x8x8xf32> -> vector<2x8x32xf32>
    %268 = vector.shape_cast %267 : vector<2x8x32xf32> to vector<16x32xf32>
    %269 = arith.truncf %268 : vector<16x32xf32> to vector<16x32xbf16>
    %cst_66 = arith.constant dense<0.000000e+00> : vector<16x32xf32>
    %270 = tpu.matmul %269, %11, %cst_66 {dimension_numbers = #tpu.dot_dimension_numbers<[1], [0], [0], [1], [0, 0, 1, 1], [], []>} : vector<16x32xbf16>, vector<32x32xbf16>, vector<16x32xf32> -> vector<16x32xf32>
    %271 = arith.addf %147, %270 : vector<16x32xf32>
    %272 = vector.broadcast %23 : vector<1x32xf32> to vector<16x32xf32>
    %273 = arith.addf %271, %272 : vector<16x32xf32>
    %cst_67 = arith.constant dense<0.000000e+00> : vector<16xf32>
    %274 = vector.multi_reduction <add>, %273, %cst_67 [1] : vector<16x32xf32> to vector<16xf32>
    %275 = vector.shape_cast %274 : vector<16xf32> to vector<16x1xf32>
    %cst_68 = arith.constant 3.200000e+01 : f32
    %276 = vector.broadcast %cst_68 : f32 to vector<16x1xf32>
    %277 = arith.divf %275, %276 : vector<16x1xf32>
    %278 = vector.broadcast %277 : vector<16x1xf32> to vector<16x32xf32>
    %279 = arith.subf %273, %278 : vector<16x32xf32>
    %280 = arith.mulf %279, %279 : vector<16x32xf32>
    %cst_69 = arith.constant dense<0.000000e+00> : vector<16xf32>
    %281 = vector.multi_reduction <add>, %280, %cst_69 [1] : vector<16x32xf32> to vector<16xf32>
    %282 = vector.shape_cast %281 : vector<16xf32> to vector<16x1xf32>
    %cst_70 = arith.constant 3.200000e+01 : f32
    %283 = vector.broadcast %cst_70 : f32 to vector<16x1xf32>
    %284 = arith.divf %282, %283 : vector<16x1xf32>
    %285 = vector.broadcast %277 : vector<16x1xf32> to vector<16x32xf32>
    %286 = arith.subf %273, %285 : vector<16x32xf32>
    %cst_71 = arith.constant 9.99999974E-6 : f32
    %287 = vector.broadcast %cst_71 : f32 to vector<16x1xf32>
    %288 = arith.addf %284, %287 : vector<16x1xf32>
    %289 = math.rsqrt %288 : vector<16x1xf32>
    %290 = vector.broadcast %289 : vector<16x1xf32> to vector<16x32xf32>
    %291 = arith.mulf %286, %290 : vector<16x32xf32>
    %292 = vector.broadcast %17 : vector<1x32xf32> to vector<16x32xf32>
    %293 = arith.mulf %291, %292 : vector<16x32xf32>
    %294 = vector.broadcast %18 : vector<1x32xf32> to vector<16x32xf32>
    %295 = arith.addf %293, %294 : vector<16x32xf32>
    %296 = arith.truncf %295 : vector<16x32xf32> to vector<16x32xbf16>
    %cst_72 = arith.constant dense<0.000000e+00> : vector<16x64xf32>
    %297 = tpu.matmul %296, %12, %cst_72 {dimension_numbers = #tpu.dot_dimension_numbers<[1], [0], [0], [1], [0, 0, 1, 1], [], []>} : vector<16x32xbf16>, vector<32x64xbf16>, vector<16x64xf32> -> vector<16x64xf32>
    %298 = vector.broadcast %24 : vector<1x64xf32> to vector<16x64xf32>
    %299 = arith.addf %297, %298 : vector<16x64xf32>
    %cst_73 = arith.constant 0.000000e+00 : f32
    %300 = vector.broadcast %cst_73 : f32 to vector<16x64xf32>
    %301 = arith.maximumf %299, %300 : vector<16x64xf32>
    %302 = arith.truncf %301 : vector<16x64xf32> to vector<16x64xbf16>
    %cst_74 = arith.constant dense<0.000000e+00> : vector<16x32xf32>
    %303 = tpu.matmul %302, %5, %cst_74 {dimension_numbers = #tpu.dot_dimension_numbers<[1], [0], [0], [1], [0, 0, 1, 1], [], []>} : vector<16x64xbf16>, vector<64x32xbf16>, vector<16x32xf32> -> vector<16x32xf32>
    %304 = arith.addf %273, %303 : vector<16x32xf32>
    %305 = vector.broadcast %25 : vector<1x32xf32> to vector<16x32xf32>
    %306 = arith.addf %304, %305 : vector<16x32xf32>
    %c0_75 = arith.constant 0 : index
    %c0_76 = arith.constant 0 : index
    %307 = vector.load %arg8[%c0_75, %c0_76] : memref<16x32xf32, #tpu.memory_space<vmem>>, vector<16x32xf32>
    tpu.vector_store %arg8[%c0_75, %c0_76], %306 {strides = array<i32>} : memref<16x32xf32, #tpu.memory_space<vmem>>, vector<16x32xf32>,
    return
  }
  func.func @transform_0(%arg0: i32) -> (i32, i32) {
    %c0_i32 = arith.constant 0 : i32
    %c0_i32_0 = arith.constant 0 : i32
    %c0_i32_1 = arith.constant 0 : i32
    return %c0_i32, %c0_i32_0 : i32, i32
  }
  func.func @transform_1(%arg0: i32) -> (i32, i32) {
    %c0_i32 = arith.constant 0 : i32
    %c0_i32_0 = arith.constant 0 : i32
    %c0_i32_1 = arith.constant 0 : i32
    return %c0_i32, %c0_i32_0 : i32, i32
  }
  func.func @transform_2(%arg0: i32) -> (i32, i32, i32) {
    %c0_i32 = arith.constant 0 : i32
    %c0_i32_0 = arith.constant 0 : i32
    %c0_i32_1 = arith.constant 0 : i32
    %c0_i32_2 = arith.constant 0 : i32
    return %c0_i32, %c0_i32_0, %c0_i32_1 : i32, i32, i32
  }
  func.func @transform_3(%arg0: i32) -> (i32, i32, i32) {
    %c0_i32 = arith.constant 0 : i32
    %c0_i32_0 = arith.constant 0 : i32
    %c0_i32_1 = arith.constant 0 : i32
    %c0_i32_2 = arith.constant 0 : i32
    return %c0_i32, %c0_i32_0, %c0_i32_1 : i32, i32, i32
  }
  func.func @transform_4(%arg0: i32) -> (i32, i32) {
    %c0_i32 = arith.constant 0 : i32
    %c0_i32_0 = arith.constant 0 : i32
    %c0_i32_1 = arith.constant 0 : i32
    return %c0_i32, %c0_i32_0 : i32, i32
  }
  func.func @transform_5(%arg0: i32) -> (i32, i32) {
    %c0_i32 = arith.constant 0 : i32
    %c0_i32_0 = arith.constant 0 : i32
    %c0_i32_1 = arith.constant 0 : i32
    return %c0_i32, %c0_i32_0 : i32, i32
  }
  func.func @transform_6(%arg0: i32) -> (i32, i32) {
    %c0_i32 = arith.constant 0 : i32
    %c0_i32_0 = arith.constant 0 : i32
    %c0_i32_1 = arith.constant 0 : i32
    return %c0_i32, %c0_i32_0 : i32, i32
  }
  func.func @transform_7(%arg0: i32) -> (i32, i32) {
    %c0_i32 = arith.constant 0 : i32
    %c0_i32_0 = arith.constant 0 : i32
    %c0_i32_1 = arith.constant 0 : i32
    return %c0_i32, %c0_i32_0 : i32, i32
  }
}

</mosaic_0001>

<bundles_post_ra>
// kernel: decoder_layer.1
= control target key start
LH: loop header
LB: loop body
LE: loop exit
PB: predicated region body
PF: predicated region fallthrough
CT: control target
= control target key end

     0   :  { %12 = vsyncpa [#allocation3], 0  ;;  %s2310_s0 = inlined_call_operand.vmem [shape: f32[16,32], index: 0, kind: input, shape index: {}, may-alias: {0,7}]   ;;  %s2311_s1 = inlined_call_operand.hbm [shape: f32[16,32], index: 1, kind: input, shape index: {}]   ;;  %s2312_s2 = inlined_call_operand.hbm [shape: f32[2,8,8], index: 2, kind: input, shape index: {}]   ;;  %s2313_s3 = inlined_call_operand.hbm [shape: f32[2,8,8], index: 3, kind: input, shape index: {}]   ;;  %s2314_s4 = inlined_call_operand.vmem [shape: bf16[32,320], index: 4, kind: input, shape index: {}]   ;;  %s2315_s5 = inlined_call_operand.vmem [shape: bf16[64,32], index: 5, kind: input, shape index: {}]   ;;  %s2316_s6 = inlined_call_operand.hbm [shape: f32[13,128], index: 6, kind: input, shape index: {}]   ;;  %s2317_s7 = inlined_call_operand.vmem [shape: f32[16,32], index: 7, kind: output, shape index: {}, may-alias: {0,7}]  }
   0x1   :  { %13 = vsyncpa [#allocation5], 0 }
   0x2   :  { %14 = vsyncpa [#allocation8], 0  ;;  %s34_s26 = sshll.u32 %s2312_s2, 4  ;;  %s1807_s27 = smov [#allocation4]   ;;  %s35_s26 = int_to_ptr.hbm [resolvable:$true] %s34_s26 }
   0x3   :  { %s36_s28 = sshll.u32 %s1807_s27, 4  ;;  %s21_s8 = sshll.u32 %s2311_s1, 4  ;;  %s37_s28 = int_to_ptr.vmem [resolvable:$true] %s36_s28  ;;  %s22_s8 = int_to_ptr.hbm [resolvable:$true] %s21_s8 }
   0x4   :  { %s1808_s9 = smov 128   ;;  %s1809_s10 = smov 8  }
   0x5   :  { %42 = dma.hbm_to_vmem [thread:$0]  %s35_s26, 256, %s37_s28, [#allocation5], %s1808_s9, %s1808_s9, %s1809_s10  }
   0x6   :  { %s1810_s11 = smov [#allocation2]   ;;  %s47_s15 = sshll.u32 %s2313_s3, 4  ;;  %s48_s15 = int_to_ptr.hbm [resolvable:$true] %s47_s15 }
   0x7   :  { %s23_s12 = sshll.u32 %s1810_s11, 4  ;;  %s64_s17 = sshll.u32 %s2316_s6, 4  ;;  %s24_s12 = int_to_ptr.vmem [resolvable:$true] %s23_s12  ;;  %s65_s17 = int_to_ptr.hbm [resolvable:$true] %s64_s17 }
   0x8   :  { %29 = dma.hbm_to_vmem [thread:$0]  %s22_s8, 256, %s24_s12, [#allocation3], %s1808_s9, %s1808_s9, %s1809_s10  }
   0x9   :  { %s1811_s1 = smov [#allocation6]   ;;  %s1812_s19 = smov [#allocation7]  }
   0xa   :  { %s49_s18 = sshll.u32 %s1811_s1, 4  ;;  %s66_s20 = sshll.u32 %s1812_s19, 4  ;;  %s50_s18 = int_to_ptr.vmem [resolvable:$true] %s49_s18  ;;  %s67_s20 = int_to_ptr.vmem [resolvable:$true] %s66_s20 }
   0xb   :  { %55 = dma.hbm_to_vmem [thread:$0]  %s48_s15, 256, %s50_s18, [#allocation5], %s1808_s9, %s1808_s9, %s1809_s10  }
   0xc   :  { %72 = dma.hbm_to_vmem [thread:$0]  %s65_s17, 256, %s67_s20, [#allocation8], %s1808_s9, %s1808_s9, %s1809_s10  }
   0xd   :  { %1801 = dma.done.wait [#allocation3], 256  }
   0xe   :  { %1802 = vsyncadd [#allocation3], 4294967040 }
   0xf   :  { %1803 = dma.done.wait [#allocation5], 512  }
  0x10   :  { %1804 = vsyncadd [#allocation5], 4294966784 }
  0x11   :  { %1805 = dma.done.wait [#allocation8], 256  }
  0x12   :  { %1806 = vsyncadd [#allocation8], 4294967040  ;;  %vm116_vm0 = vcmask 261120   ;;  %v1888_v0 = vld [vmem:[%s2310_s0] sm:$0xff]  ;;  %v1895_v2 = vld [vmem:[%s2310_s0 + $0x8] sm:$0xff]  ;;  %v1813_v4 = vmov 32.0  }
  0x13   :  { %v117_v1 = vsel %vm116_vm0, %v1888_v0, 0.0  ;;  %v120_v3 = vsel %vm116_vm0, %v1895_v2, 0.0  ;;  %1626 = vrcp.f32 %v1813_v4  ;;  %v1491_v21 = vld [vmem:[%s2314_s4 + $0x18] sm:$0xf]  ;;  %v1568_v22 = vld [vmem:[%s2314_s4 + $0x20] sm:$0xf0] }
  0x14   :  { %118 = vadd.xlane.f32.xlu0 %v117_v1  ;;  %v1913_v23 = vor.u32 %v1568_v22, %v1491_v21  ;;  %v1487_v24 = vld [vmem:[%s2314_s4] sm:$0xf]  ;;  %v1565_v25 = vld [vmem:[%s2314_s4 + $0x8] sm:$0xf0]  ;;  %v1927_v44 = vld [vmem:[#allocation7] sm:$0xff]  ;;  %s1814_s30 = smov 88  }
  0x15   :  { %v1922_v27 = vor.u32 %v1565_v25, %v1487_v24  ;;  %v168_v47 = vperm.slane %v1927_v44, 0  ;;  %v171_v52 = vperm.slane %v1927_v44, 1  ;;  %v175_v57 = vperm.slane %v1927_v44, 6  ;;  %s1815_s8 = smov 96   ;;  %s1816_s9 = smov 80  }
  0x16   :  { %197 = vmatpush.bf16.msra.mxu0 %v1913_v23  ;;  %s1817_s11 = smov 112   ;;  %s1818_s12 = smov 72   ;;  %vm216_vm8 = vcmask 64512   ;;  %vm289_vm11 = vcmask 1043456   ;;  %vm689_vm12 = vcmask 130048   ;;  %vm692_vm13 = vcmask 195584  }
  0x17   :  { %s1819_s13 = smov 120   ;;  %s1820_s14 = smov 104  }
  0x18   :  { %s1822_s15 = smov 64   ;;  %s1823_s2 = smov 56  }
  0x19   :  { %v1627_v5 = vpop.eup %1626  ;;  %s1824_s16 = smov 48   ;;  %s1825_s17 = smov 40  }
  0x1a   :  { %v124_v6 = vmul.f32 32.0, %v1627_v5  ;;  %vm128_vm1 = vweird.f32 %v1627_v5  ;;  %198 = vmatpush.bf16.msra.mxu0 %v1922_v27  ;;  %s1826_s1 = smov 32   ;;  %s1827_s18 = smov 16  }
  0x1b   :  { %s1828_s19 = smov 24  }
  0x1c   :  { %121 = vadd.xlane.f32.xlu0 %v120_v3  ;;  %v125_v7 = vsub.f32 1.0, %v124_v6 }
  0x1e   :  { %v126_v8 = vmul.f32 %v1627_v5, %v125_v7 }
  0x20   :  { %v127_v9 = vadd.f32 %v1627_v5, %v126_v8 }
  0x22   :  { %v1899_v10 = vsel %vm128_vm1, %v1627_v5, %v127_v9 }
  0x87   :  { %v119_v11 = vpop.xlane.xlu0 %118 }
  0x88   :  { %v130_v12 = vmul.f32 %v1899_v10, %v119_v11 }
  0x8a   :  { %v132_v13 = vsub.f32 %v1888_v0, %v130_v12 }
  0x8c   :  { %v134_v14 = vmul.f32 %v132_v13, %v132_v13 }
  0x8e   :  { %v136_v15 = vsel %vm116_vm0, %v134_v14, 0.0 }
  0x8f   :  { %137 = vadd.xlane.f32.xlu1 %v136_v15  ;;  %v122_v16 = vpop.xlane.xlu0 %121 }
  0x90   :  { %v131_v17 = vmul.f32 %v1899_v10, %v122_v16 }
  0x92   :  { %v133_v18 = vsub.f32 %v1895_v2, %v131_v17 }
  0x94   :  { %v135_v19 = vmul.f32 %v133_v18, %v133_v18 }
  0x96   :  { %v139_v20 = vsel %vm116_vm0, %v135_v19, 0.0 }
  0x97   :  { %140 = vadd.xlane.f32.xlu1 %v139_v20 }
 0x102   :  { %v138_v26 = vpop.xlane.xlu1 %137 }
 0x103   :  { %v142_v28 = vmul.f32 %v138_v26, %v1899_v10 }
 0x105   :  { %v144_v29 = vadd.f32 1e-05, %v142_v28 }
 0x107   :  { %1628 = vrsqrt.f32 %v144_v29  ;;  %vm152_vm3 = vweird.f32 %v144_v29 }
 0x10a   :  { %v141_v30 = vpop.xlane.xlu1 %140 }
 0x10b   :  { %v143_v31 = vmul.f32 %v141_v30, %v1899_v10 }
 0x10d   :  { %v1629_v32 = vpop.eup %1628  ;;  %v145_v33 = vadd.f32 1e-05, %v143_v31  ;;  %v94_v31 = vld [vmem:[#allocation4] sm:$0xff] }
 0x10e   :  { %v147_v34 = vmul.f32 %v1629_v32, %v144_v29  ;;  %vm153_vm2 = vweird.f32 %v1629_v32  ;;  %vm205_vm9 = vcmp.gt.f32.partialorder %v94_v31, 0.0 }
 0x10f   :  { %1630 = vrsqrt.f32 %v145_v33  ;;  %vm154_vm4 = vmor %vm152_vm3, %vm153_vm2  ;;  %vm162_vm6 = vweird.f32 %v145_v33 }
 0x110   :  { %v148_v35 = vmul.f32 %v1629_v32, %v147_v34 }
 0x112   :  { %v149_v36 = vmul.f32 0.5, %v148_v35 }
 0x114   :  { %v150_v37 = vsub.f32 1.5, %v149_v36 }
 0x115   :  { %v1631_v38 = vpop.eup %1630 }
 0x116   :  { %v151_v39 = vmul.f32 %v1629_v32, %v150_v37  ;;  %v157_v40 = vmul.f32 %v1631_v38, %v145_v33  ;;  %vm163_vm5 = vweird.f32 %v1631_v38  ;;  %v95_v37 = vld [vmem:[#allocation4 + $0x8] sm:$0xff] }
 0x117   :  { %vm164_vm7 = vmor %vm162_vm6, %vm163_vm5  ;;  %vm206_vm10 = vcmp.gt.f32.partialorder %v95_v37, 0.0 }
 0x118   :  { %v158_v41 = vmul.f32 %v1631_v38, %v157_v40  ;;  %v155_v42 = vsel %vm154_vm4, %v1629_v32, %v151_v39  ;;  %v1821_v32 = vmov -1e+09  }
 0x119   :  { %v166_v46 = vmul.f32 %v155_v42, %v132_v13  ;;  %v207_v33 = vsel %vm205_vm9, 0.0, %v1821_v32  ;;  %v208_v39 = vsel %vm206_vm10, 0.0, %v1821_v32 }
 0x11a   :  { %v159_v43 = vmul.f32 0.5, %v158_v41 }
 0x11b   :  { %v169_v51 = vmul.f32 %v168_v47, %v166_v46 }
 0x11c   :  { %v160_v45 = vsub.f32 1.5, %v159_v43 }
 0x11d   :  { %v172_v54 = vadd.f32 %v171_v52, %v169_v51 }
 0x11e   :  { %v161_v48 = vmul.f32 %v1631_v38, %v160_v45 }
 0x120   :  { %v165_v49 = vsel %vm164_vm7, %v1631_v38, %v161_v48 }
 0x121   :  { %v167_v50 = vmul.f32 %v165_v49, %v133_v18 }
 0x123   :  { %v170_v53 = vmul.f32 %v168_v47, %v167_v50 }
 0x125   :  { %v173_v55 = vadd.f32 %v171_v52, %v170_v53 }
 0x127   :  { %v174_v56 = vpack.c.bf16 %v173_v55, %v172_v54 }
 0x129   :  { %1493 = vmatmul.msk.bf16.vlgmr.msra.gmra.mxu0 %vm116_vm0, %v174_v56 }
 0x1a6   :  { %v200_v58 = vpop.f32.mrf.mxu0 }
 0x1a7   :  { %v201_v59 = vadd.f32 %v200_v58, %v175_v57 }
 0x1a9   :  { %v209_v60 = vpack.c.bf16 %v201_v59, %v201_v59 }
 0x1ab   :  { %v212_v61 = vunpack.c.l.b16 %v209_v60 }
 0x1ad   :  { %v1933_v62 = vpack.c.b16 %v212_v61, %v212_v61 }
 0x1ae   :  { %v202_v63 = vpop.f32.mrf.mxu0 }
 0x1af   :  { %v203_v1 = vadd.f32 %v202_v63, %v175_v57  ;;  %329 = vrot.lane.b32.xlu0 %v1933_v62, %s1814_s30  ;;  %214 = vrot.lane.b32.xlu2 %v1933_v62, %s1815_s8 }
 0x1b1   :  { %v210_v3 = vpack.c.bf16 %v203_v1, %v203_v1 }
 0x1b3   :  { %v237_v4 = vunpack.c.l.b16 %v210_v3 }
 0x1b5   :  { %v1939_v5 = vpack.c.b16 %v237_v4, %v237_v4 }
 0x1b7   :  { %352 = vrot.lane.b32.xlu1 %v1939_v5, %s1814_s30  ;;  %464 = vrot.lane.b32.xlu0 %v1939_v5, %s1816_s9 }
 0x1b8   :  { %239 = vrot.lane.b32.xlu2 %v1939_v5, %s1815_s8 }
 0x1bf   :  { %462 = vrot.lane.b32.xlu1 %v1939_v5, %s1817_s11  ;;  %553 = vrot.lane.b32.xlu0 %v1933_v62, %s1818_s12 }
 0x1c0   :  { %327 = vrot.lane.b32.xlu2 %v1933_v62, %s1819_s13 }
 0x1c7   :  { %551 = vrot.lane.b32.xlu1 %v1933_v62, %s1820_s14  ;;  %574 = vrot.lane.b32.xlu0 %v1939_v5, %s1820_s14 }
 0x1c8   :  { %350 = vrot.lane.b32.xlu2 %v1939_v5, %s1819_s13 }
 0x1d0   :  { %441 = vrot.lane.b32.xlu2 %v1933_v62, %s1816_s9 }
 0x1d8   :  { %439 = vrot.lane.b32.xlu2 %v1933_v62, %s1817_s11 }
 0x1e0   :  { %576 = vrot.lane.b32.xlu2 %v1939_v5, %s1818_s12 }
 0x209   :  { %v215_v6 = vpop.permute.xlu2 %214 }
 0x20a   :  { %v221_v7 = vsel %vm216_vm8, %v215_v6, 0 }
 0x20b   :  { %230 = vmatpush.bf16.xpose.msra.mxu1 %v221_v7 }
 0x212   :  { %v240_v8 = vpop.permute.xlu2 %239  ;;  %1494 = vmatmul.msk.bf16.vlgmr.msra.gmra.mxu1 %vm216_vm8, %v209_v60 }
 0x213   :  { %v245_v9 = vsel %vm216_vm8, %v240_v8, 0 }
 0x214   :  { %254 = vmatpush.bf16.xpose.msra.mxu2 %v245_v9 }
 0x21a   :  { %v328_v11 = vpop.permute.xlu2 %327 }
 0x21b   :  { %1495 = vmatmul.msk.bf16.vlgmr.msra.gmra.mxu2 %vm216_vm8, %v210_v3 }
 0x221   :  { %v330_v12 = vpop.permute.xlu0 %329 }
 0x222   :  { %v351_v13 = vpop.permute.xlu2 %350  ;;  %v335_v14 = vsel %vm216_vm8, %v330_v12, 0 }
 0x223   :  { %344 = vmatpush.bf16.xpose.msrb.mxu0 %v335_v14 }
 0x229   :  { %v353_v15 = vpop.permute.xlu1 %352  ;;  %v465_v16 = vpop.permute.xlu0 %464 }
 0x22a   :  { %v470_v17 = vsel %vm216_vm8, %v465_v16, 0  ;;  %v442_v18 = vpop.permute.xlu2 %441  ;;  %1498 = vmatmul.msk.bf16.vlgmr.msrb.gmra.mxu0 %vm216_vm8, %v328_v11  ;;  %v358_v19 = vsel %vm216_vm8, %v353_v15, 0 }
 0x22b   :  { %v447_v20 = vsel %vm216_vm8, %v442_v18, 0  ;;  %367 = vmatpush.bf16.xpose.msrb.mxu1 %v358_v19 }
 0x22c   :  { %456 = vmatpush.bf16.xpose.msra.mxu0 %v447_v20 }
 0x231   :  { %v554_v21 = vpop.permute.xlu0 %553  ;;  %v463_v28 = vpop.permute.xlu1 %462 }
 0x232   :  { %v559_v22 = vsel %vm216_vm8, %v554_v21, 0  ;;  %v440_v24 = vpop.permute.xlu2 %439  ;;  %1499 = vmatmul.msk.bf16.vlgmr.msrb.gmra.mxu1 %vm216_vm8, %v351_v13 }
 0x233   :  { %479 = vmatpush.bf16.xpose.msra.mxu1 %v470_v17 }
 0x234   :  { %568 = vmatpush.bf16.xpose.msrb.mxu0 %v559_v22 }
 0x239   :  { %v552_v29 = vpop.permute.xlu1 %551  ;;  %v575_v30 = vpop.permute.xlu0 %574 }
 0x23a   :  { %v577_v25 = vpop.permute.xlu2 %576  ;;  %1502 = vmatmul.msk.bf16.vlgmr.msra.gmra.mxu0 %vm216_vm8, %v440_v24 }
 0x23b   :  { %v582_v26 = vsel %vm216_vm8, %v577_v25, 0 }
 0x23c   :  { %591 = vmatpush.bf16.xpose.msrb.mxu1 %v582_v26 }
 0x242   :  { %1503 = vmatmul.msk.bf16.vlgmr.msra.gmra.mxu1 %vm216_vm8, %v463_v28 }
 0x24a   :  { %1506 = vmatmul.msk.bf16.vlgmr.msrb.gmra.mxu0 %vm216_vm8, %v552_v29 }
 0x252   :  { %1507 = vmatmul.msk.bf16.vlgmr.msrb.gmra.mxu1 %vm216_vm8, %v575_v30 }
 0x28f   :  { %v232_v34 = vpop.f32.mrf.mxu1 }
 0x290   :  { %v233_v35 = vadd.f32 %v232_v34, %v207_v33 }
 0x292   :  { %v260_v36 = vsel %vm216_vm8, %v233_v35, -inf }
 0x293   :  { %261 = vmax.xlane.f32.xlu2 %v260_v36 }
 0x297   :  { %v234_v38 = vpop.f32.mrf.mxu1 }
 0x29e   :  { %v256_v40 = vpop.f32.mrf.mxu2 }
 0x29f   :  { %v257_v41 = vadd.f32 %v256_v40, %v208_v39 }
 0x2a1   :  { %v263_v42 = vsel %vm216_vm8, %v257_v41, -inf }
 0x2a2   :  { %264 = vmax.xlane.f32.xlu1 %v263_v42 }
 0x2a6   :  { %v258_v43 = vpop.f32.mrf.mxu2 }
 0x2a7   :  { %v346_v45 = vpop.f32.mrf.mxu0 }
 0x2a8   :  { %v347_v46 = vadd.f32 %v346_v45, %v207_v33 }
 0x2aa   :  { %v373_v47 = vsel %vm216_vm8, %v347_v46, -inf }
 0x2ab   :  { %306 = vrot.lane.b32.xlu2 %v1939_v5, %s1822_s15  ;;  %374 = vmax.xlane.f32.xlu0 %v373_v47 }
 0x2af   :  { %v348_v48 = vpop.f32.mrf.mxu0  ;;  %v369_v49 = vpop.f32.mrf.mxu1 }
 0x2b0   :  { %v370_v58 = vadd.f32 %v369_v49, %v208_v39 }
 0x2b2   :  { %v376_v60 = vsel %vm216_vm8, %v370_v58, -inf }
 0x2b3   :  { %418 = vrot.lane.b32.xlu2 %v1939_v5, %s1823_s2 }
 0x2b7   :  { %v371_v50 = vpop.f32.mrf.mxu1  ;;  %v458_v51 = vpop.f32.mrf.mxu0 }
 0x2b8   :  { %v459_v63 = vadd.f32 %v458_v51, %v207_v33 }
 0x2ba   :  { %v485_v4 = vsel %vm216_vm8, %v459_v63, -inf }
 0x2bb   :  { %284 = vrot.lane.b32.xlu1 %v1933_v62, %s1822_s15 }
 0x2bf   :  { %397 = vrot.lane.b32.xlu0 %v1933_v62, %s1823_s2  ;;  %v460_v52 = vpop.f32.mrf.mxu0  ;;  %v481_v53 = vpop.f32.mrf.mxu1 }
 0x2c0   :  { %v482_v3 = vadd.f32 %v481_v53, %v208_v39 }
 0x2c2   :  { %v488_v6 = vsel %vm216_vm8, %v482_v3, -inf }
 0x2c7   :  { %v483_v54 = vpop.f32.mrf.mxu1  ;;  %v570_v55 = vpop.f32.mrf.mxu0 }
 0x2c8   :  { %v571_v7 = vadd.f32 %v570_v55, %v207_v33 }
 0x2ca   :  { %v597_v8 = vsel %vm216_vm8, %v571_v7, -inf }
 0x2cf   :  { %v572_v56 = vpop.f32.mrf.mxu0  ;;  %v593_v57 = vpop.f32.mrf.mxu1 }
 0x2d0   :  { %v1991_v61 = vadd.f32 %v593_v57, %v208_v39 }
 0x2d2   :  { %v600_v1 = vsel %vm216_vm8, %v1991_v61, -inf }
 0x2d7   :  { %v595_v59 = vpop.f32.mrf.mxu1 }
 0x2dc   :  { %377 = vmax.xlane.f32.xlu2 %v376_v60 }
 0x2e4   :  { %601 = vmax.xlane.f32.xlu2 %v600_v1 }
 0x2e5   :  { %486 = vmax.xlane.f32.xlu1 %v485_v4 }
 0x2e9   :  { %489 = vmax.xlane.f32.xlu0 %v488_v6 }
 0x2f1   :  { %598 = vmax.xlane.f32.xlu0 %v597_v8 }
 0x306   :  { %v262_v9 = vpop.xlane.xlu2 %261 }
 0x307   :  { %v266_v11 = vsub.f32 %v233_v35, %v262_v9 }
 0x309   :  { %v268_v12 = vmul.f32 1.442695, %v266_v11 }
 0x30b   :  { %1632 = vpow2.f32 %v268_v12 }
 0x30e   :  { %v307_v24 = vpop.permute.xlu2 %306 }
 0x30f   :  { %v312_v29 = vsel %vm289_vm11, %v307_v24, 0 }
 0x311   :  { %v1998_v13 = vpop.eup %1632 }
 0x312   :  { %v272_v14 = vsel %vm216_vm8, %v1998_v13, 0.0 }
 0x313   :  { %273 = vadd.xlane.f32.xlu2 %v272_v14 }
 0x315   :  { %v265_v15 = vpop.xlane.xlu1 %264 }
 0x316   :  { %v267_v18 = vsub.f32 %v257_v41, %v265_v15  ;;  %v419_v34 = vpop.permute.xlu2 %418 }
 0x318   :  { %v270_v20 = vmul.f32 1.442695, %v267_v18 }
 0x31e   :  { %v375_v16 = vpop.xlane.xlu0 %374 }
 0x31f   :  { %v379_v17 = vsub.f32 %v347_v46, %v375_v16 }
 0x321   :  { %v381_v19 = vmul.f32 1.442695, %v379_v17 }
 0x323   :  { %1634 = vpow2.f32 %v381_v19 }
 0x324   :  { %1636 = vpow2.f32 %v270_v20 }
 0x329   :  { %v2002_v21 = vpop.eup %1634 }
 0x32a   :  { %v385_v22 = vsel %vm216_vm8, %v2002_v21, 0.0  ;;  %v2009_v28 = vpop.eup %1636 }
 0x32b   :  { %386 = vadd.xlane.f32.xlu0 %v385_v22  ;;  %530 = vrot.lane.b32.xlu2 %v1939_v5, %s1824_s16  ;;  %v275_v33 = vsel %vm216_vm8, %v2009_v28, 0.0 }
 0x32d   :  { %v285_v25 = vpop.permute.xlu1 %284 }
 0x32e   :  { %v291_v26 = vsel %vm289_vm11, %v285_v25, 0 }
 0x32f   :  { %300 = vmatpush.bf16.msra.mxu3 %v291_v26 }
 0x331   :  { %v398_v30 = vpop.permute.xlu0 %397 }
 0x332   :  { %v403_v31 = vsel %vm289_vm11, %v398_v30, 0 }
 0x333   :  { %321 = vmatpush.bf16.msrb.mxu3 %v312_v29  ;;  %412 = vmatpush.bf16.msrb.mxu2 %v403_v31 }
 0x334   :  { %276 = vadd.xlane.f32.xlu0 %v275_v33 }
 0x34f   :  { %v378_v35 = vpop.xlane.xlu2 %377 }
 0x350   :  { %v380_v36 = vsub.f32 %v370_v58, %v378_v35 }
 0x352   :  { %v383_v37 = vmul.f32 1.442695, %v380_v36 }
 0x354   :  { %1638 = vpow2.f32 %v383_v37 }
 0x357   :  { %v602_v56 = vpop.xlane.xlu2 %601 }
 0x358   :  { %v487_v38 = vpop.xlane.xlu1 %486  ;;  %v604_v59 = vsub.f32 %v1991_v61, %v602_v56 }
 0x359   :  { %v491_v39 = vsub.f32 %v459_v63, %v487_v38 }
 0x35a   :  { %v1639_v40 = vpop.eup %1638  ;;  %v607_v1 = vmul.f32 1.442695, %v604_v59 }
 0x35b   :  { %v493_v41 = vmul.f32 1.442695, %v491_v39  ;;  %v388_v42 = vsel %vm216_vm8, %v1639_v40, 0.0 }
 0x35c   :  { %v490_v43 = vpop.xlane.xlu0 %489  ;;  %389 = vadd.xlane.f32.xlu1 %v388_v42 }
 0x35d   :  { %1640 = vpow2.f32 %v493_v41  ;;  %v492_v45 = vsub.f32 %v482_v3, %v490_v43  ;;  %v424_v3 = vsel %vm289_vm11, %v419_v34, 0 }
 0x35f   :  { %v495_v46 = vmul.f32 1.442695, %v492_v45 }
 0x361   :  { %1642 = vpow2.f32 %v495_v46 }
 0x363   :  { %v2016_v47 = vpop.eup %1640 }
 0x364   :  { %v599_v48 = vpop.xlane.xlu0 %598  ;;  %v497_v49 = vsel %vm216_vm8, %v2016_v47, 0.0 }
 0x365   :  { %v603_v50 = vsub.f32 %v571_v7, %v599_v48  ;;  %498 = vadd.xlane.f32.xlu2 %v497_v49 }
 0x367   :  { %v1643_v51 = vpop.eup %1642  ;;  %v605_v52 = vmul.f32 1.442695, %v603_v50 }
 0x368   :  { %v500_v53 = vsel %vm216_vm8, %v1643_v51, 0.0 }
 0x369   :  { %1644 = vpow2.f32 %v605_v52  ;;  %501 = vadd.xlane.f32.xlu0 %v500_v53 }
 0x36f   :  { %v2021_v54 = vpop.eup %1644 }
 0x370   :  { %v609_v55 = vsel %vm216_vm8, %v2021_v54, 0.0 }
 0x371   :  { %610 = vadd.xlane.f32.xlu0 %v609_v55 }
 0x375   :  { %509 = vrot.lane.b32.xlu1 %v1933_v62, %s1824_s16 }
 0x37d   :  { %642 = vrot.lane.b32.xlu2 %v1939_v5, %s1825_s17 }
 0x385   :  { %621 = vrot.lane.b32.xlu0 %v1933_v62, %s1825_s17 }
 0x386   :  { %v274_v57 = vpop.xlane.xlu2 %273 }
 0x387   :  { %1646 = vrcp.f32 %v274_v57 }
 0x388   :  { %1648 = vpow2.f32 %v607_v1 }
 0x38d   :  { %v1647_v58 = vpop.eup %1646  ;;  %698 = vrot.lane.b32.xlu0 %v1913_v23, %s1826_s1 }
 0x38e   :  { %v280_v60 = vmul.f32 %v1647_v58, %v1998_v13  ;;  %v1649_v4 = vpop.eup %1648  ;;  %v531_v12 = vpop.permute.xlu2 %530 }
 0x38f   :  { %v612_v6 = vsel %vm216_vm8, %v1649_v4, 0.0  ;;  %v536_v14 = vsel %vm289_vm11, %v531_v12, 0 }
 0x390   :  { %v282_v63 = vpack.c.bf16 %v280_v60, %v280_v60 }
 0x392   :  { %1496 = vmatmul.msk.bf16.vlgmr.msra.gmra.mxu3 %vm216_vm8, %v282_v63 }
 0x393   :  { %433 = vmatpush.bf16.msra.mxu3 %v424_v3 }
 0x39e   :  { %v387_v5 = vpop.xlane.xlu0 %386 }
 0x39f   :  { %1650 = vrcp.f32 %v387_v5  ;;  %613 = vadd.xlane.f32.xlu1 %v612_v6 }
 0x3a5   :  { %v1651_v62 = vpop.eup %1650 }
 0x3a6   :  { %v393_v7 = vmul.f32 %v1651_v62, %v2002_v21 }
 0x3a7   :  { %v277_v61 = vpop.xlane.xlu0 %276 }
 0x3a8   :  { %1652 = vrcp.f32 %v277_v61  ;;  %v395_v8 = vpack.c.bf16 %v393_v7, %v393_v7 }
 0x3aa   :  { %1500 = vmatmul.msk.bf16.vlgmr.msrb.gmra.mxu2 %vm216_vm8, %v395_v8 }
 0x3ae   :  { %v1653_v9 = vpop.eup %1652 }
 0x3af   :  { %v281_v11 = vmul.f32 %v1653_v9, %v2009_v28 }
 0x3b1   :  { %v283_v13 = vpack.c.bf16 %v281_v11, %v281_v11 }
 0x3b3   :  { %1497 = vmatmul.msk.bf16.vlgmr.msrb.gmra.mxu3 %vm216_vm8, %v283_v13 }
 0x3b4   :  { %545 = vmatpush.bf16.msrb.mxu3 %v536_v14 }
 0x3cf   :  { %v390_v15 = vpop.xlane.xlu1 %389 }
 0x3d0   :  { %1654 = vrcp.f32 %v390_v15 }
 0x3d6   :  { %v1655_v16 = vpop.eup %1654 }
 0x3d7   :  { %v394_v17 = vmul.f32 %v1655_v16, %v1639_v40 }
 0x3d8   :  { %v499_v18 = vpop.xlane.xlu2 %498 }
 0x3d9   :  { %v396_v19 = vpack.c.bf16 %v394_v17, %v394_v17  ;;  %1656 = vrcp.f32 %v499_v18 }
 0x3db   :  { %1501 = vmatmul.msk.bf16.vlgmr.msra.gmra.mxu3 %vm216_vm8, %v396_v19  ;;  %v1567_v19 = vld [vmem:[%s2314_s4 + $0x1c] sm:$0xf] }
 0x3dc   :  { %v502_v20 = vpop.xlane.xlu0 %501 }
 0x3dd   :  { %1658 = vrcp.f32 %v502_v20  ;;  %v1515_v20 = vld [vmem:[%s2314_s4 + $0x24] sm:$0xf0] }
 0x3df   :  { %v1657_v24 = vpop.eup %1656 }
 0x3e0   :  { %v643_v21 = vpop.permute.xlu2 %642  ;;  %v505_v28 = vmul.f32 %v1657_v24, %v2016_v47 }
 0x3e1   :  { %v648_v22 = vsel %vm289_vm11, %v643_v21, 0  ;;  %v2069_v21 = vor.u32 %v1567_v19, %v1515_v20 }
 0x3e2   :  { %657 = vmatpush.bf16.msra.mxu3 %v648_v22  ;;  %v507_v33 = vpack.c.bf16 %v505_v28, %v505_v28  ;;  %v721_v22 = vperm.slane %v1927_v44, 7 }
 0x3e3   :  { %v1659_v25 = vpop.eup %1658  ;;  %793 = vmatpush.bf16.msra.mxu1 %v2069_v21 }
 0x3e4   :  { %v506_v26 = vmul.f32 %v1659_v25, %v1643_v51  ;;  %v611_v34 = vpop.xlane.xlu0 %610 }
 0x3e5   :  { %1660 = vrcp.f32 %v611_v34  ;;  %v1511_v34 = vld [vmem:[%s2314_s4 + $0xc] sm:$0xf0] }
 0x3e6   :  { %v508_v31 = vpack.c.bf16 %v506_v26, %v506_v26 }
 0x3e7   :  { %v510_v29 = vpop.permute.xlu1 %509 }
 0x3e8   :  { %v515_v30 = vsel %vm289_vm11, %v510_v29, 0 }
 0x3e9   :  { %524 = vmatpush.bf16.msra.mxu2 %v515_v30 }
 0x3eb   :  { %1505 = vmatmul.msk.bf16.vlgmr.msrb.gmra.mxu3 %vm216_vm8, %v508_v31  ;;  %v1661_v35 = vpop.eup %1660 }
 0x3ec   :  { %1504 = vmatmul.msk.bf16.vlgmr.msra.gmra.mxu2 %vm216_vm8, %v507_v33  ;;  %v617_v36 = vmul.f32 %v1661_v35, %v2021_v54 }
 0x3ee   :  { %v619_v39 = vpack.c.bf16 %v617_v36, %v617_v36 }
 0x3f7   :  { %v622_v37 = vpop.permute.xlu0 %621 }
 0x3f8   :  { %v627_v38 = vsel %vm289_vm11, %v622_v37, 0 }
 0x3f9   :  { %636 = vmatpush.bf16.msrb.mxu2 %v627_v38 }
 0x3fc   :  { %1508 = vmatmul.msk.bf16.vlgmr.msrb.gmra.mxu2 %vm216_vm8, %v619_v39 }
 0x3ff   :  { %v699_v60 = vpop.permute.xlu0 %698 }
 0x400   :  { %711 = vmatpush.bf16.msra.mxu0 %v699_v60 }
 0x412   :  { %v614_v23 = vpop.xlane.xlu1 %613 }
 0x413   :  { %1662 = vrcp.f32 %v614_v23 }
 0x415   :  { %v302_v40 = vpop.f32.mrf.mxu3 }
 0x419   :  { %v1663_v41 = vpop.eup %1662 }
 0x41a   :  { %v618_v42 = vmul.f32 %v1663_v41, %v1649_v4 }
 0x41c   :  { %v620_v43 = vpack.c.bf16 %v618_v42, %v618_v42 }
 0x41d   :  { %v304_v45 = vpop.f32.mrf.mxu3 }
 0x41e   :  { %1509 = vmatmul.msk.bf16.vlgmr.msra.gmra.mxu3 %vm216_vm8, %v620_v43 }
 0x42d   :  { %v414_v46 = vpop.f32.mrf.mxu2 }
 0x435   :  { %v416_v48 = vpop.f32.mrf.mxu2 }
 0x436   :  { %v323_v47 = vpop.f32.mrf.mxu3 }
 0x43e   :  { %v325_v49 = vpop.f32.mrf.mxu3 }
 0x45e   :  { %v435_v50 = vpop.f32.mrf.mxu3 }
 0x45f   :  { %v1596_v51 = vpack.i.bf16 %v435_v50, %v414_v46 }
 0x461   :  { %1597 = vrot.lane.b32.xlu2 %v1596_v51, %s1809_s10 }
 0x466   :  { %v437_v52 = vpop.f32.mrf.mxu3 }
 0x46e   :  { %v547_v53 = vpop.f32.mrf.mxu3 }
 0x46f   :  { %v526_v54 = vpop.f32.mrf.mxu2 }
 0x470   :  { %v1601_v55 = vpack.i.bf16 %v547_v53, %v526_v54 }
 0x472   :  { %1602 = vrot.lane.b32.xlu0 %v1601_v55, %s1827_s18 }
 0x476   :  { %v549_v56 = vpop.f32.mrf.mxu3 }
 0x477   :  { %v528_v57 = vpop.f32.mrf.mxu2 }
 0x47a   :  { %696 = vrot.lane.b32.xlu0 %v1922_v27, %s1826_s1 }
 0x47f   :  { %v638_v58 = vpop.f32.mrf.mxu2 }
 0x487   :  { %v640_v59 = vpop.f32.mrf.mxu2 }
 0x4a1   :  { %v659_v63 = vpop.f32.mrf.mxu3 }
 0x4a2   :  { %v1606_v1 = vpack.i.bf16 %v659_v63, %v638_v58 }
 0x4a4   :  { %1607 = vrot.lane.b32.xlu2 %v1606_v1, %s1828_s19 }
 0x4a9   :  { %v661_v3 = vpop.f32.mrf.mxu3 }
 0x4bb   :  { %v1598_v6 = vpop.permute.xlu2 %1597 }
 0x4bc   :  { %v1600_v62 = vunpack.i.h.bf16 %v1598_v6  ;;  %v1599_v7 = vunpack.i.l.bf16 %v1598_v6 }
 0x4be   :  { %v688_v9 = vsel %vm216_vm8, %v323_v47, %v1600_v62  ;;  %v687_v11 = vsel %vm216_vm8, %v302_v40, %v1599_v7  ;;  %v92_v62 = vld [vmem:[#allocation2] sm:$0xff]  ;;  %v93_v7 = vld [vmem:[#allocation2 + $0x8] sm:$0xff] }
 0x4e4   :  { %v1603_v4 = vpop.permute.xlu0 %1602 }
 0x4e5   :  { %v1605_v61 = vunpack.i.h.bf16 %v1603_v4  ;;  %v1604_v8 = vunpack.i.l.bf16 %v1603_v4  ;;  %v768_v4 = vperm.slane %v1927_v44, 2 }
 0x4e7   :  { %v690_v14 = vsel %vm689_vm12, %v687_v11, %v1604_v8  ;;  %v691_v15 = vsel %vm689_vm12, %v688_v9, %v1605_v61  ;;  %v771_v8 = vperm.slane %v1927_v44, 3 }
 0x4ec   :  { %v697_v5 = vpop.permute.xlu0 %696 }
 0x4ed   :  { %712 = vmatpush.bf16.msra.mxu0 %v697_v5 }
 0x4fe   :  { %v1608_v27 = vpop.permute.xlu2 %1607 }
 0x4ff   :  { %v1610_v12 = vunpack.i.h.bf16 %v1608_v27  ;;  %v1609_v13 = vunpack.i.l.bf16 %v1608_v27 }
 0x501   :  { %v693_v16 = vsel %vm692_vm13, %v690_v14, %v1609_v13  ;;  %v694_v17 = vsel %vm692_vm13, %v691_v15, %v1610_v12  ;;  %v801_v12 = vpack.c.bf16 %v93_v7, %v92_v62 }
 0x502   :  { %v695_v18 = vpack.c.bf16 %v694_v17, %v693_v16  ;;  %v2108_v17 = vld [vmem:[#allocation7 + $0x8] sm:$0x1f] }
 0x503   :  { %v802_v44 = vperm.slane %v2108_v17, 1 }
 0x504   :  { %1510 = vmatmul.msk.bf16.vlgmr.msra.gmra.mxu0 %vm116_vm0, %v695_v18  ;;  %v775_v18 = vperm.slane %v2108_v17, 0 }
 0x581   :  { %v714_v24 = vpop.f32.mrf.mxu0 }
 0x582   :  { %v719_v25 = vadd.f32 %v714_v24, %v1888_v0  ;;  %v1564_v0 = vld [vmem:[%s2314_s4 + $0x4] sm:$0xf] }
 0x583   :  { %v2091_v35 = vor.u32 %v1564_v0, %v1511_v34 }
 0x584   :  { %v2074_v26 = vadd.f32 %v721_v22, %v719_v25 }
 0x585   :  { %794 = vmatpush.bf16.msra.mxu1 %v2091_v35 }
 0x586   :  { %v724_v28 = vsel %vm116_vm0, %v2074_v26, 0.0 }
 0x587   :  { %725 = vadd.xlane.f32.xlu1 %v724_v28 }
 0x589   :  { %v716_v29 = vpop.f32.mrf.mxu0 }
 0x58a   :  { %v720_v30 = vadd.f32 %v716_v29, %v1895_v2 }
 0x58c   :  { %v2079_v31 = vadd.f32 %v721_v22, %v720_v30 }
 0x58e   :  { %v727_v33 = vsel %vm116_vm0, %v2079_v31, 0.0 }
 0x58f   :  { %728 = vadd.xlane.f32.xlu2 %v727_v33 }
 0x5a0   :  { %805 = vrot.lane.b32.xlu1 %v2069_v21, %s1815_s8 }
 0x5fa   :  { %v726_v2 = vpop.xlane.xlu1 %725 }
 0x5fb   :  { %v730_v36 = vmul.f32 %v726_v2, %v1899_v10 }
 0x5fd   :  { %v732_v37 = vsub.f32 %v2074_v26, %v730_v36 }
 0x5ff   :  { %v734_v38 = vmul.f32 %v732_v37, %v732_v37 }
 0x601   :  { %v736_v39 = vsel %vm116_vm0, %v734_v38, 0.0 }
 0x602   :  { %737 = vadd.xlane.f32.xlu0 %v736_v39  ;;  %v729_v23 = vpop.xlane.xlu2 %728 }
 0x603   :  { %v731_v40 = vmul.f32 %v729_v23, %v1899_v10 }
 0x605   :  { %v733_v41 = vsub.f32 %v2079_v31, %v731_v40 }
 0x607   :  { %v735_v42 = vmul.f32 %v733_v41, %v733_v41 }
 0x609   :  { %v739_v43 = vsel %vm116_vm0, %v735_v42, 0.0 }
 0x60a   :  { %740 = vadd.xlane.f32.xlu1 %v739_v43 }
 0x612   :  { %v806_v45 = vpop.permute.xlu1 %805 }
 0x613   :  { %818 = vmatpush.bf16.msra.mxu2 %v806_v45 }
 0x623   :  { %803 = vrot.lane.b32.xlu1 %v2091_v35, %s1815_s8 }
 0x675   :  { %v738_v46 = vpop.xlane.xlu0 %737 }
 0x676   :  { %v742_v47 = vmul.f32 %v738_v46, %v1899_v10 }
 0x678   :  { %v744_v48 = vadd.f32 1e-05, %v742_v47 }
 0x67a   :  { %1664 = vrsqrt.f32 %v744_v48  ;;  %vm752_vm15 = vweird.f32 %v744_v48 }
 0x67d   :  { %v741_v49 = vpop.xlane.xlu1 %740 }
 0x67e   :  { %v743_v50 = vmul.f32 %v741_v49, %v1899_v10 }
 0x680   :  { %v1665_v51 = vpop.eup %1664  ;;  %v745_v52 = vadd.f32 1e-05, %v743_v50 }
 0x681   :  { %v747_v53 = vmul.f32 %v1665_v51, %v744_v48  ;;  %vm753_vm14 = vweird.f32 %v1665_v51 }
 0x682   :  { %1666 = vrsqrt.f32 %v745_v52  ;;  %vm754_vm1 = vmor %vm752_vm15, %vm753_vm14  ;;  %vm762_vm3 = vweird.f32 %v745_v52 }
 0x683   :  { %v748_v54 = vmul.f32 %v1665_v51, %v747_v53 }
 0x685   :  { %v749_v55 = vmul.f32 0.5, %v748_v54 }
 0x687   :  { %v750_v56 = vsub.f32 1.5, %v749_v55 }
 0x688   :  { %v1667_v57 = vpop.eup %1666 }
 0x689   :  { %v751_v58 = vmul.f32 %v1665_v51, %v750_v56  ;;  %v757_v59 = vmul.f32 %v1667_v57, %v745_v52  ;;  %vm763_vm2 = vweird.f32 %v1667_v57  ;;  %v96_v56 = vld [vmem:[#allocation6] sm:$0xff] }
 0x68a   :  { %vm764_vm4 = vmor %vm762_vm3, %vm763_vm2  ;;  %vm826_vm5 = vcmp.gt.f32.partialorder %v96_v56, 0.0 }
 0x68b   :  { %v758_v60 = vmul.f32 %v1667_v57, %v757_v59  ;;  %v755_v63 = vsel %vm754_vm1, %v1665_v51, %v751_v58  ;;  %v97_v59 = vld [vmem:[#allocation6 + $0x8] sm:$0xff] }
 0x68c   :  { %v766_v5 = vmul.f32 %v755_v63, %v732_v37  ;;  %vm827_vm6 = vcmp.gt.f32.partialorder %v97_v59, 0.0  ;;  %v2146_v63 = vsel %vm826_vm5, 0.0, %v1821_v32 }
 0x68d   :  { %v759_v1 = vmul.f32 0.5, %v758_v60 }
 0x68e   :  { %v769_v27 = vmul.f32 %v768_v4, %v766_v5 }
 0x68f   :  { %v760_v3 = vsub.f32 1.5, %v759_v1 }
 0x690   :  { %v772_v14 = vadd.f32 %v771_v8, %v769_v27 }
 0x691   :  { %v761_v6 = vmul.f32 %v1667_v57, %v760_v3  ;;  %v2149_v3 = vsel %vm827_vm6, 0.0, %v1821_v32 }
 0x693   :  { %v765_v61 = vsel %vm764_vm4, %v1667_v57, %v761_v6 }
 0x694   :  { %v767_v9 = vmul.f32 %v765_v61, %v733_v41 }
 0x695   :  { %v804_v11 = vpop.permute.xlu1 %803 }
 0x696   :  { %v770_v13 = vmul.f32 %v768_v4, %v767_v9  ;;  %819 = vmatpush.bf16.msra.mxu2 %v804_v11 }
 0x698   :  { %v773_v15 = vadd.f32 %v771_v8, %v770_v13 }
 0x699   :  { %1520 = vmatmul.msk.bf16.vlgmr.msra.gmra.mxu2 %vm116_vm0, %v801_v12 }
 0x69a   :  { %v774_v16 = vpack.c.bf16 %v773_v15, %v772_v14 }
 0x69c   :  { %1519 = vmatmul.msk.bf16.vlgmr.msra.gmra.mxu1 %vm116_vm0, %v774_v16 }
 0x719   :  { %v796_v19 = vpop.f32.mrf.mxu1 }
 0x71a   :  { %v797_v20 = vadd.f32 %v796_v19, %v775_v18 }
 0x71c   :  { %v830_v22 = vpack.c.bf16 %v797_v20, %v797_v20  ;;  %v821_v24 = vpop.f32.mrf.mxu2 }
 0x71d   :  { %v822_v25 = vadd.f32 %v821_v24, %v802_v44 }
 0x71e   :  { %v945_v28 = vunpack.c.l.b16 %v830_v22 }
 0x71f   :  { %v832_v29 = vpack.c.bf16 %v822_v25, %v822_v25 }
 0x720   :  { %v946_v30 = vpack.c.b16 %v945_v28, %v945_v28 }
 0x721   :  { %v838_v33 = vsel %vm216_vm8, %v832_v29, 0  ;;  %v897_v0 = vunpack.c.l.b16 %v832_v29  ;;  %v798_v34 = vpop.f32.mrf.mxu1 }
 0x722   :  { %v799_v2 = vadd.f32 %v798_v34, %v775_v18  ;;  %947 = vrot.lane.b32.xlu1 %v946_v30, %s1819_s13  ;;  %847 = vmatpush.bf16.xpose.msrb.mxu3 %v838_v33 }
 0x723   :  { %v2114_v36 = vpack.c.b16 %v897_v0, %v897_v0 }
 0x724   :  { %v831_v37 = vpack.c.bf16 %v799_v2, %v799_v2  ;;  %v823_v38 = vpop.f32.mrf.mxu2 }
 0x725   :  { %v824_v39 = vadd.f32 %v823_v38, %v802_v44  ;;  %949 = vrot.lane.b32.xlu2 %v2114_v36, %s1819_s13 }
 0x726   :  { %v971_v23 = vunpack.c.l.b16 %v831_v37 }
 0x727   :  { %v833_v40 = vpack.c.bf16 %v824_v39, %v824_v39 }
 0x728   :  { %v972_v41 = vpack.c.b16 %v971_v23, %v971_v23 }
 0x729   :  { %v857_v42 = vsel %vm216_vm8, %v833_v40, 0  ;;  %v921_v43 = vunpack.c.l.b16 %v833_v40  ;;  %1521 = vmatmul.msk.bf16.vlgmr.msrb.gmra.mxu3 %vm216_vm8, %v830_v22 }
 0x72a   :  { %973 = vrot.lane.b32.xlu1 %v972_v41, %s1819_s13  ;;  %866 = vmatpush.bf16.xpose.msrb.mxu0 %v857_v42 }
 0x72b   :  { %v2121_v45 = vpack.c.b16 %v921_v43, %v921_v43 }
 0x72d   :  { %975 = vrot.lane.b32.xlu0 %v2121_v45, %s1819_s13  ;;  %1087 = vrot.lane.b32.xlu2 %v2121_v45, %s1817_s11 }
 0x731   :  { %1522 = vmatmul.msk.bf16.vlgmr.msrb.gmra.mxu0 %vm216_vm8, %v831_v37 }
 0x732   :  { %1064 = vrot.lane.b32.xlu1 %v2114_v36, %s1817_s11 }
 0x735   :  { %1062 = vrot.lane.b32.xlu0 %v946_v30, %s1817_s11  ;;  %1176 = vrot.lane.b32.xlu2 %v2114_v36, %s1820_s14 }
 0x73a   :  { %1085 = vrot.lane.b32.xlu1 %v972_v41, %s1817_s11 }
 0x73d   :  { %1199 = vrot.lane.b32.xlu0 %v2121_v45, %s1820_s14  ;;  %1197 = vrot.lane.b32.xlu2 %v972_v41, %s1820_s14 }
 0x742   :  { %1174 = vrot.lane.b32.xlu1 %v946_v30, %s1820_s14 }
 0x77f   :  { %v950_v46 = vpop.permute.xlu2 %949 }
 0x780   :  { %v955_v47 = vsel %vm216_vm8, %v950_v46, 0 }
 0x781   :  { %964 = vmatpush.bf16.xpose.msra.mxu3 %v955_v47 }
 0x787   :  { %v1088_v49 = vpop.permute.xlu2 %1087 }
 0x788   :  { %v1093_v53 = vsel %vm216_vm8, %v1088_v49, 0 }
 0x78f   :  { %v1177_v54 = vpop.permute.xlu2 %1176 }
 0x790   :  { %v1182_v58 = vsel %vm216_vm8, %v1177_v54, 0 }
 0x794   :  { %v948_v48 = vpop.permute.xlu1 %947 }
 0x795   :  { %1525 = vmatmul.msk.bf16.vlgmr.msra.gmra.mxu3 %vm216_vm8, %v948_v48 }
 0x797   :  { %v1198_v12 = vpop.permute.xlu2 %1197 }
 0x79c   :  { %v974_v50 = vpop.permute.xlu1 %973 }
 0x79f   :  { %v976_v51 = vpop.permute.xlu0 %975 }
 0x7a0   :  { %v981_v52 = vsel %vm216_vm8, %v976_v51, 0 }
 0x7a1   :  { %990 = vmatpush.bf16.xpose.msra.mxu0 %v981_v52 }
 0x7a4   :  { %v1065_v55 = vpop.permute.xlu1 %1064 }
 0x7a5   :  { %v1070_v57 = vsel %vm216_vm8, %v1065_v55, 0 }
 0x7a6   :  { %1079 = vmatpush.bf16.xpose.msrb.mxu3 %v1070_v57 }
 0x7a7   :  { %v1063_v60 = vpop.permute.xlu0 %1062 }
 0x7a8   :  { %1526 = vmatmul.msk.bf16.vlgmr.msra.gmra.mxu0 %vm216_vm8, %v974_v50 }
 0x7a9   :  { %1102 = vmatpush.bf16.xpose.msrb.mxu0 %v1093_v53 }
 0x7ac   :  { %v849_v1 = vpop.f32.mrf.mxu3  ;;  %v1086_v27 = vpop.permute.xlu1 %1085 }
 0x7ad   :  { %v850_v4 = vadd.f32 %v849_v1, %v2146_v63  ;;  %1529 = vmatmul.msk.bf16.vlgmr.msrb.gmra.mxu3 %vm216_vm8, %v1063_v60 }
 0x7ae   :  { %1191 = vmatpush.bf16.xpose.msra.mxu3 %v1182_v58  ;;  %v868_v5 = vpop.f32.mrf.mxu0 }
 0x7af   :  { %v869_v6 = vadd.f32 %v868_v5, %v2149_v3  ;;  %v1200_v62 = vpop.permute.xlu0 %1199  ;;  %v872_v7 = vsel %vm216_vm8, %v850_v4, -inf }
 0x7b0   :  { %v1205_v61 = vsel %vm216_vm8, %v1200_v62, 0  ;;  %873 = vmax.xlane.f32.xlu1 %v872_v7 }
 0x7b1   :  { %1214 = vmatpush.bf16.xpose.msra.mxu0 %v1205_v61  ;;  %v875_v8 = vsel %vm216_vm8, %v869_v6, -inf }
 0x7b2   :  { %876 = vmax.xlane.f32.xlu0 %v875_v8 }
 0x7b4   :  { %v851_v32 = vpop.f32.mrf.mxu3  ;;  %v1175_v11 = vpop.permute.xlu1 %1174 }
 0x7b6   :  { %v870_v9 = vpop.f32.mrf.mxu0 }
 0x7b8   :  { %1530 = vmatmul.msk.bf16.vlgmr.msrb.gmra.mxu0 %vm216_vm8, %v1086_v27 }
 0x7bd   :  { %1533 = vmatmul.msk.bf16.vlgmr.msra.gmra.mxu3 %vm216_vm8, %v1175_v11 }
 0x7c8   :  { %1534 = vmatmul.msk.bf16.vlgmr.msra.gmra.mxu0 %vm216_vm8, %v1198_v12 }
 0x818   :  { %v966_v13 = vpop.f32.mrf.mxu3 }
 0x819   :  { %v967_v14 = vadd.f32 %v966_v13, %v2146_v63 }
 0x81b   :  { %v996_v15 = vsel %vm216_vm8, %v967_v14, -inf }
 0x81c   :  { %997 = vmax.xlane.f32.xlu0 %v996_v15 }
 0x820   :  { %v968_v16 = vpop.f32.mrf.mxu3 }
 0x823   :  { %v874_v18 = vpop.xlane.xlu1 %873 }
 0x824   :  { %v878_v19 = vsub.f32 %v850_v4, %v874_v18 }
 0x825   :  { %v877_v44 = vpop.xlane.xlu0 %876  ;;  %v992_v20 = vpop.f32.mrf.mxu0 }
 0x826   :  { %v880_v22 = vmul.f32 1.442695, %v878_v19  ;;  %v879_v24 = vsub.f32 %v869_v6, %v877_v44  ;;  %v993_v25 = vadd.f32 %v992_v20, %v2149_v3 }
 0x828   :  { %1668 = vpow2.f32 %v880_v22  ;;  %v882_v28 = vmul.f32 1.442695, %v879_v24  ;;  %v999_v29 = vsel %vm216_vm8, %v993_v25, -inf }
 0x829   :  { %1000 = vmax.xlane.f32.xlu2 %v999_v29 }
 0x82a   :  { %1670 = vpow2.f32 %v882_v28 }
 0x82d   :  { %v994_v30 = vpop.f32.mrf.mxu0 }
 0x82e   :  { %v1669_v33 = vpop.eup %1668 }
 0x82f   :  { %v884_v0 = vsel %vm216_vm8, %v1669_v33, 0.0 }
 0x830   :  { %v2165_v34 = vpop.eup %1670  ;;  %v1081_v2 = vpop.f32.mrf.mxu3  ;;  %885 = vadd.xlane.f32.xlu0 %v884_v0 }
 0x831   :  { %v1082_v37 = vadd.f32 %v1081_v2, %v2146_v63  ;;  %v887_v38 = vsel %vm216_vm8, %v2165_v34, 0.0 }
 0x832   :  { %888 = vadd.xlane.f32.xlu1 %v887_v38 }
 0x833   :  { %v1108_v39 = vsel %vm216_vm8, %v1082_v37, -inf }
 0x834   :  { %1109 = vmax.xlane.f32.xlu2 %v1108_v39 }
 0x835   :  { %v1104_v23 = vpop.f32.mrf.mxu0 }
 0x836   :  { %v1105_v40 = vadd.f32 %v1104_v23, %v2149_v3 }
 0x838   :  { %v1083_v41 = vpop.f32.mrf.mxu3  ;;  %v1111_v42 = vsel %vm216_vm8, %v1105_v40, -inf }
 0x83a   :  { %1112 = vmax.xlane.f32.xlu1 %v1111_v42 }
 0x83d   :  { %v1106_v43 = vpop.f32.mrf.mxu0 }
 0x840   :  { %v1193_v46 = vpop.f32.mrf.mxu3 }
 0x841   :  { %v2182_v50 = vadd.f32 %v1193_v46, %v2146_v63 }
 0x843   :  { %v1220_v52 = vsel %vm216_vm8, %v2182_v50, -inf }
 0x844   :  { %1041 = vrot.lane.b32.xlu0 %v2121_v45, %s1814_s30 }
 0x845   :  { %v1216_v47 = vpop.f32.mrf.mxu0 }
 0x846   :  { %v2185_v51 = vadd.f32 %v1216_v47, %v2149_v3 }
 0x848   :  { %v1195_v48 = vpop.f32.mrf.mxu3  ;;  %v1223_v53 = vsel %vm216_vm8, %v2185_v51, -inf }
 0x84c   :  { %899 = vrot.lane.b32.xlu2 %v2114_v36, %s1815_s8  ;;  %1153 = vrot.lane.b32.xlu0 %v2121_v45, %s1816_s9 }
 0x84d   :  { %v1218_v49 = vpop.f32.mrf.mxu0 }
 0x853   :  { %923 = vrot.lane.b32.xlu1 %v2121_v45, %s1815_s8 }
 0x875   :  { %1221 = vmax.xlane.f32.xlu2 %v1220_v52 }
 0x876   :  { %1224 = vmax.xlane.f32.xlu0 %v1223_v53 }
 0x88d   :  { %1020 = vrot.lane.b32.xlu2 %v2114_v36, %s1814_s30 }
 0x88f   :  { %v998_v54 = vpop.xlane.xlu0 %997 }
 0x890   :  { %v1002_v55 = vsub.f32 %v967_v14, %v998_v54 }
 0x892   :  { %v1004_v56 = vmul.f32 1.442695, %v1002_v55 }
 0x894   :  { %1672 = vpow2.f32 %v1004_v56 }
 0x89a   :  { %v2193_v57 = vpop.eup %1672 }
 0x89b   :  { %v1008_v58 = vsel %vm216_vm8, %v2193_v57, 0.0 }
 0x89c   :  { %v1001_v59 = vpop.xlane.xlu2 %1000  ;;  %1009 = vadd.xlane.f32.xlu0 %v1008_v58 }
 0x89d   :  { %v1003_v60 = vsub.f32 %v993_v25, %v1001_v59 }
 0x89f   :  { %v1006_v63 = vmul.f32 1.442695, %v1003_v60 }
 0x8a1   :  { %1674 = vpow2.f32 %v1006_v63 }
 0x8a3   :  { %v886_v1 = vpop.xlane.xlu0 %885 }
 0x8a4   :  { %1676 = vrcp.f32 %v886_v1 }
 0x8a5   :  { %v889_v3 = vpop.xlane.xlu1 %888 }
 0x8a7   :  { %v2197_v4 = vpop.eup %1674  ;;  %v1110_v5 = vpop.xlane.xlu2 %1109 }
 0x8a8   :  { %v1114_v6 = vsub.f32 %v1082_v37, %v1110_v5  ;;  %v1011_v62 = vsel %vm216_vm8, %v2197_v4, 0.0 }
 0x8a9   :  { %1012 = vadd.xlane.f32.xlu0 %v1011_v62 }
 0x8aa   :  { %v1116_v7 = vmul.f32 1.442695, %v1114_v6  ;;  %v1677_v61 = vpop.eup %1676 }
 0x8ab   :  { %v892_v27 = vmul.f32 %v1677_v61, %v1669_v33 }
 0x8ac   :  { %1678 = vpow2.f32 %v1116_v7 }
 0x8ad   :  { %v1113_v8 = vpop.xlane.xlu1 %1112  ;;  %v894_v14 = vpack.c.bf16 %v892_v27, %v892_v27 }
 0x8ae   :  { %v1115_v32 = vsub.f32 %v1105_v40, %v1113_v8 }
 0x8af   :  { %v900_v9 = vpop.permute.xlu2 %899 }
 0x8b0   :  { %v1118_v11 = vmul.f32 1.442695, %v1115_v32  ;;  %v905_v12 = vsel %vm289_vm11, %v900_v9, 0 }
 0x8b1   :  { %914 = vmatpush.bf16.msrb.mxu1 %v905_v12 }
 0x8b2   :  { %v2202_v13 = vpop.eup %1678  ;;  %1680 = vpow2.f32 %v1118_v11 }
 0x8b3   :  { %v1120_v15 = vsel %vm216_vm8, %v2202_v13, 0.0  ;;  %1682 = vrcp.f32 %v889_v3 }
 0x8b4   :  { %1523 = vmatmul.msk.bf16.vlgmr.msrb.gmra.mxu1 %vm216_vm8, %v894_v14 }
 0x8b6   :  { %1121 = vadd.xlane.f32.xlu2 %v1120_v15  ;;  %v1042_v19 = vpop.permute.xlu0 %1041 }
 0x8b7   :  { %v1047_v25 = vsel %vm289_vm11, %v1042_v19, 0 }
 0x8b8   :  { %v2207_v16 = vpop.eup %1680 }
 0x8b9   :  { %v1123_v18 = vsel %vm216_vm8, %v2207_v16, 0.0  ;;  %v1683_v44 = vpop.eup %1682 }
 0x8ba   :  { %1124 = vadd.xlane.f32.xlu1 %v1123_v18  ;;  %v893_v20 = vmul.f32 %v1683_v44, %v2165_v34 }
 0x8bc   :  { %v895_v29 = vpack.c.bf16 %v893_v20, %v893_v20 }
 0x8bd   :  { %1132 = vrot.lane.b32.xlu0 %v2114_v36, %s1816_s9 }
 0x8be   :  { %v1154_v28 = vpop.permute.xlu0 %1153 }
 0x8bf   :  { %v1159_v30 = vsel %vm289_vm11, %v1154_v28, 0 }
 0x8c5   :  { %v924_v22 = vpop.permute.xlu1 %923 }
 0x8c6   :  { %v929_v24 = vsel %vm289_vm11, %v924_v22, 0 }
 0x8c7   :  { %938 = vmatpush.bf16.msrb.mxu2 %v929_v24 }
 0x8ca   :  { %1524 = vmatmul.msk.bf16.vlgmr.msrb.gmra.mxu2 %vm216_vm8, %v895_v29 }
 0x8cb   :  { %1056 = vmatpush.bf16.msra.mxu2 %v1047_v25 }
 0x8ce   :  { %1265 = vrot.lane.b32.xlu2 %v2121_v45, %s1818_s12 }
 0x8cf   :  { %1168 = vmatpush.bf16.msrb.mxu2 %v1159_v30 }
 0x8d6   :  { %1319 = vrot.lane.b32.xlu2 %v2069_v21, %s1826_s1 }
 0x8e8   :  { %v1222_v33 = vpop.xlane.xlu2 %1221 }
 0x8e9   :  { %v1226_v0 = vsub.f32 %v2182_v50, %v1222_v33  ;;  %v1225_v34 = vpop.xlane.xlu0 %1224 }
 0x8ea   :  { %v1227_v2 = vsub.f32 %v2185_v51, %v1225_v34 }
 0x8eb   :  { %v1228_v37 = vmul.f32 1.442695, %v1226_v0 }
 0x8ec   :  { %v1230_v38 = vmul.f32 1.442695, %v1227_v2 }
 0x8ed   :  { %1684 = vpow2.f32 %v1228_v37 }
 0x8ee   :  { %1686 = vpow2.f32 %v1230_v38 }
 0x8f0   :  { %v1021_v39 = vpop.permute.xlu2 %1020 }
 0x8f1   :  { %v1026_v23 = vsel %vm289_vm11, %v1021_v39, 0 }
 0x8f2   :  { %1035 = vmatpush.bf16.msra.mxu1 %v1026_v23 }
 0x8f3   :  { %v1685_v40 = vpop.eup %1684 }
 0x8f4   :  { %v1687_v41 = vpop.eup %1686  ;;  %v1232_v45 = vsel %vm216_vm8, %v1685_v40, 0.0 }
 0x8f5   :  { %1233 = vadd.xlane.f32.xlu1 %v1232_v45  ;;  %v1235_v21 = vsel %vm216_vm8, %v1687_v41, 0.0 }
 0x8f6   :  { %1236 = vadd.xlane.f32.xlu0 %v1235_v21 }
 0x90e   :  { %1244 = vrot.lane.b32.xlu1 %v2114_v36, %s1818_s12 }
 0x90f   :  { %v1010_v42 = vpop.xlane.xlu0 %1009 }
 0x910   :  { %1688 = vrcp.f32 %v1010_v42 }
 0x916   :  { %v1689_v43 = vpop.eup %1688 }
 0x917   :  { %v1016_v46 = vmul.f32 %v1689_v43, %v2193_v57 }
 0x919   :  { %v1018_v47 = vpack.c.bf16 %v1016_v46, %v1016_v46 }
 0x91b   :  { %1527 = vmatmul.msk.bf16.vlgmr.msra.gmra.mxu1 %vm216_vm8, %v1018_v47 }
 0x91c   :  { %v1013_v48 = vpop.xlane.xlu0 %1012 }
 0x91d   :  { %1690 = vrcp.f32 %v1013_v48 }
 0x923   :  { %v1691_v49 = vpop.eup %1690 }
 0x924   :  { %v1017_v50 = vmul.f32 %v1691_v49, %v2197_v4 }
 0x926   :  { %v1019_v51 = vpack.c.bf16 %v1017_v50, %v1017_v50 }
 0x928   :  { %1528 = vmatmul.msk.bf16.vlgmr.msra.gmra.mxu2 %vm216_vm8, %v1019_v51  ;;  %v1342_v51 = vperm.slane %v2108_v17, 2 }
 0x929   :  { %v1122_v52 = vpop.xlane.xlu2 %1121 }
 0x92a   :  { %1692 = vrcp.f32 %v1122_v52 }
 0x92d   :  { %v1125_v53 = vpop.xlane.xlu1 %1124 }
 0x92e   :  { %1694 = vrcp.f32 %v1125_v53 }
 0x92f   :  { %v1133_v36 = vpop.permute.xlu0 %1132 }
 0x930   :  { %v1693_v54 = vpop.eup %1692  ;;  %v1138_v55 = vsel %vm289_vm11, %v1133_v36, 0 }
 0x931   :  { %v1128_v56 = vmul.f32 %v1693_v54, %v2202_v13  ;;  %v1266_v57 = vpop.permute.xlu2 %1265  ;;  %v916_v58 = vpop.f32.mrf.mxu1  ;;  %1147 = vmatpush.bf16.msrb.mxu1 %v1138_v55 }
 0x932   :  { %v1271_v59 = vsel %vm289_vm11, %v1266_v57, 0 }
 0x933   :  { %v1130_v60 = vpack.c.bf16 %v1128_v56, %v1128_v56  ;;  %1280 = vmatpush.bf16.msra.mxu2 %v1271_v59 }
 0x934   :  { %v1695_v63 = vpop.eup %1694 }
 0x935   :  { %v1129_v1 = vmul.f32 %v1695_v63, %v2207_v16  ;;  %1531 = vmatmul.msk.bf16.vlgmr.msrb.gmra.mxu1 %vm216_vm8, %v1130_v60 }
 0x937   :  { %v1131_v3 = vpack.c.bf16 %v1129_v1, %v1129_v1 }
 0x939   :  { %v918_v4 = vpop.f32.mrf.mxu1  ;;  %1532 = vmatmul.msk.bf16.vlgmr.msrb.gmra.mxu2 %vm216_vm8, %v1131_v3  ;;  %v1320_v34 = vpop.permute.xlu2 %1319 }
 0x93a   :  { %1332 = vmatpush.bf16.msrb.mxu3 %v1320_v34 }
 0x94d   :  { %v940_v5 = vpop.f32.mrf.mxu2 }
 0x955   :  { %v942_v6 = vpop.f32.mrf.mxu2 }
 0x968   :  { %v1234_v8 = vpop.xlane.xlu1 %1233 }
 0x969   :  { %v1237_v62 = vpop.xlane.xlu0 %1236 }
 0x96a   :  { %1696 = vrcp.f32 %v1237_v62  ;;  %v1544_v62 = vld [vmem:[%s2314_s4 + $0x20] sm:$0xf] }
 0x96b   :  { %1698 = vrcp.f32 %v1234_v8 }
 0x970   :  { %v1697_v7 = vpop.eup %1696 }
 0x971   :  { %v1241_v61 = vmul.f32 %v1697_v7, %v1687_v41  ;;  %v1699_v32 = vpop.eup %1698  ;;  %v1569_v7 = vld [vmem:[%s2314_s4 + $0x28] sm:$0xf0] }
 0x972   :  { %v1240_v9 = vmul.f32 %v1699_v32, %v1685_v40  ;;  %v1540_v32 = vld [vmem:[%s2314_s4 + $0x8] sm:$0xf] }
 0x973   :  { %v1243_v27 = vpack.c.bf16 %v1241_v61, %v1241_v61  ;;  %v1545_v61 = vor.u32 %v1569_v7, %v1544_v62 }
 0x974   :  { %v1242_v13 = vpack.c.bf16 %v1240_v9, %v1240_v9  ;;  %v1566_v9 = vld [vmem:[%s2314_s4 + $0x10] sm:$0xf0] }
 0x975   :  { %1536 = vmatmul.msk.bf16.vlgmr.msra.gmra.mxu2 %vm216_vm8, %v1243_v27  ;;  %1418 = vmatpush.bf16.msrb.mxu0 %v1545_v61 }
 0x980   :  { %v1245_v11 = vpop.permute.xlu1 %1244 }
 0x981   :  { %v1250_v12 = vsel %vm289_vm11, %v1245_v11, 0 }
 0x982   :  { %1259 = vmatpush.bf16.msra.mxu1 %v1250_v12  ;;  %v1541_v12 = vor.u32 %v1566_v9, %v1540_v32 }
 0x984   :  { %1419 = vmatpush.bf16.msrb.mxu0 %v1541_v12 }
 0x985   :  { %1535 = vmatmul.msk.bf16.vlgmr.msra.gmra.mxu1 %vm216_vm8, %v1242_v13 }
 0x998   :  { %v1037_v14 = vpop.f32.mrf.mxu1 }
 0x9a0   :  { %v1039_v15 = vpop.f32.mrf.mxu1 }
 0x9ab   :  { %v1058_v16 = vpop.f32.mrf.mxu2 }
 0x9ac   :  { %v1611_v18 = vpack.i.bf16 %v1058_v16, %v1037_v14 }
 0x9ae   :  { %1612 = vrot.lane.b32.xlu0 %v1611_v18, %s1809_s10 }
 0x9b2   :  { %v1149_v19 = vpop.f32.mrf.mxu1 }
 0x9b3   :  { %v1060_v44 = vpop.f32.mrf.mxu2 }
 0x9ba   :  { %v1151_v20 = vpop.f32.mrf.mxu1 }
 0x9bc   :  { %v1170_v22 = vpop.f32.mrf.mxu2 }
 0x9bd   :  { %v1616_v24 = vpack.i.bf16 %v1170_v22, %v1149_v19 }
 0x9bf   :  { %1617 = vrot.lane.b32.xlu1 %v1616_v24, %s1827_s18 }
 0x9c4   :  { %v1172_v25 = vpop.f32.mrf.mxu2 }
 0x9c7   :  { %1317 = vrot.lane.b32.xlu1 %v2091_v35, %s1826_s1 }
 0x9f8   :  { %v1282_v28 = vpop.f32.mrf.mxu2 }
 0xa00   :  { %v1284_v29 = vpop.f32.mrf.mxu2 }
 0xa02   :  { %v1261_v30 = vpop.f32.mrf.mxu1 }
 0xa03   :  { %v1621_v33 = vpack.i.bf16 %v1282_v28, %v1261_v30 }
 0xa05   :  { %1622 = vrot.lane.b32.xlu2 %v1621_v33, %s1828_s19 }
 0xa0a   :  { %v1263_v0 = vpop.f32.mrf.mxu1 }
 0xa0b   :  { %v1704_v0 = vld [vmem:[#allocation7] sm:$0xff] }
 0xa20   :  { %v1613_v38 = vpop.permute.xlu0 %1612 }
 0xa21   :  { %v1615_v39 = vunpack.i.h.bf16 %v1613_v38  ;;  %v1614_v23 = vunpack.i.l.bf16 %v1613_v38  ;;  %v1392_v38 = vperm.slane %v1704_v0, 5 }
 0xa23   :  { %v1311_v35 = vsel %vm216_vm8, %v940_v5, %v1615_v39  ;;  %v1310_v21 = vsel %vm216_vm8, %v916_v58, %v1614_v23 }
 0xa31   :  { %v1618_v2 = vpop.permute.xlu1 %1617 }
 0xa32   :  { %v1620_v40 = vunpack.i.h.bf16 %v1618_v2  ;;  %v1619_v41 = vunpack.i.l.bf16 %v1618_v2 }
 0xa34   :  { %v1313_v46 = vsel %vm689_vm12, %v1311_v35, %v1620_v40  ;;  %v1312_v47 = vsel %vm689_vm12, %v1310_v21, %v1619_v41  ;;  %v1573_v21 = vld [vmem:[%s2315_s5 + $0x18] sm:$0xff] }
 0xa35   :  { %1461 = vmatpush.bf16.msrb.mxu1 %v1573_v21 }
 0xa39   :  { %v1318_v37 = vpop.permute.xlu1 %1317 }
 0xa3a   :  { %1333 = vmatpush.bf16.msrb.mxu3 %v1318_v37 }
 0xa5f   :  { %v1623_v45 = vpop.permute.xlu2 %1622 }
 0xa60   :  { %v1625_v42 = vunpack.i.h.bf16 %v1623_v45  ;;  %v1624_v43 = vunpack.i.l.bf16 %v1623_v45 }
 0xa62   :  { %v1314_v48 = vsel %vm692_vm13, %v1312_v47, %v1624_v43  ;;  %v1315_v49 = vsel %vm692_vm13, %v1313_v46, %v1625_v42  ;;  %v1572_v42 = vld [vmem:[%s2315_s5 + $0x10] sm:$0xff]  ;;  %v1571_v43 = vld [vmem:[%s2315_s5 + $0x8] sm:$0xff]  ;;  %v1570_v46 = vld [vmem:[%s2315_s5] sm:$0xff]  ;;  %vm1453_vm13 = vcmask 523264  }
 0xa63   :  { %v1316_v50 = vpack.c.bf16 %v1315_v49, %v1314_v48  ;;  %1462 = vmatpush.bf16.msrb.mxu1 %v1572_v42  ;;  %v1396_v48 = vperm.slane %v2108_v17, 3 }
 0xa65   :  { %1537 = vmatmul.msk.bf16.vlgmr.msrb.gmra.mxu3 %vm116_vm0, %v1316_v50 }
 0xa67   :  { %1463 = vmatpush.bf16.msrb.mxu1 %v1571_v43 }
 0xa6b   :  { %1464 = vmatpush.bf16.msrb.mxu1 %v1570_v46 }
 0xae8   :  { %v1335_v52 = vpop.f32.mrf.mxu3 }
 0xae9   :  { %v1340_v53 = vadd.f32 %v1335_v52, %v2074_v26 }
 0xaeb   :  { %v2256_v36 = vadd.f32 %v1342_v51, %v1340_v53 }
 0xaed   :  { %v1345_v54 = vsel %vm116_vm0, %v2256_v36, 0.0 }
 0xaee   :  { %1346 = vadd.xlane.f32.xlu2 %v1345_v54 }
 0xaf0   :  { %v1337_v55 = vpop.f32.mrf.mxu3 }
 0xaf1   :  { %v1341_v56 = vadd.f32 %v1337_v55, %v2079_v31  ;;  %v1473_v55 = vperm.slane %v2108_v17, 4 }
 0xaf3   :  { %v2261_v57 = vadd.f32 %v1342_v51, %v1341_v56 }
 0xaf5   :  { %v1348_v58 = vsel %vm116_vm0, %v2261_v57, 0.0 }
 0xaf6   :  { %1349 = vadd.xlane.f32.xlu1 %v1348_v58 }
 0xb61   :  { %v1347_v59 = vpop.xlane.xlu2 %1346 }
 0xb62   :  { %v1351_v60 = vmul.f32 %v1347_v59, %v1899_v10 }
 0xb64   :  { %v1353_v26 = vsub.f32 %v2256_v36, %v1351_v60 }
 0xb66   :  { %v1355_v63 = vmul.f32 %v1353_v26, %v1353_v26 }
 0xb68   :  { %v1357_v1 = vsel %vm116_vm0, %v1355_v63, 0.0 }
 0xb69   :  { %1358 = vadd.xlane.f32.xlu0 %v1357_v1  ;;  %v1350_v3 = vpop.xlane.xlu1 %1349 }
 0xb6a   :  { %v1352_v4 = vmul.f32 %v1350_v3, %v1899_v10 }
 0xb6c   :  { %v1354_v31 = vsub.f32 %v2261_v57, %v1352_v4 }
 0xb6e   :  { %v1356_v5 = vmul.f32 %v1354_v31, %v1354_v31 }
 0xb70   :  { %v1360_v6 = vsel %vm116_vm0, %v1356_v5, 0.0 }
 0xb71   :  { %1361 = vadd.xlane.f32.xlu2 %v1360_v6 }
 0xbdc   :  { %v1359_v8 = vpop.xlane.xlu0 %1358 }
 0xbdd   :  { %v1363_v27 = vmul.f32 %v1359_v8, %v1899_v10 }
 0xbdf   :  { %v1365_v11 = vadd.f32 1e-05, %v1363_v27 }
 0xbe1   :  { %1700 = vrsqrt.f32 %v1365_v11  ;;  %vm1373_vm8 = vweird.f32 %v1365_v11 }
 0xbe4   :  { %v1362_v13 = vpop.xlane.xlu2 %1361 }
 0xbe5   :  { %v1364_v14 = vmul.f32 %v1362_v13, %v1899_v10  ;;  %v1389_v10 = vperm.slane %v1704_v0, 4 }
 0xbe7   :  { %v1701_v15 = vpop.eup %1700  ;;  %v1366_v16 = vadd.f32 1e-05, %v1364_v14 }
 0xbe8   :  { %v1368_v18 = vmul.f32 %v1701_v15, %v1365_v11  ;;  %vm1374_vm7 = vweird.f32 %v1701_v15 }
 0xbe9   :  { %1702 = vrsqrt.f32 %v1366_v16  ;;  %vm1375_vm9 = vmor %vm1373_vm8, %vm1374_vm7  ;;  %vm1383_vm11 = vweird.f32 %v1366_v16 }
 0xbea   :  { %v1369_v19 = vmul.f32 %v1701_v15, %v1368_v18 }
 0xbec   :  { %v1370_v44 = vmul.f32 0.5, %v1369_v19 }
 0xbee   :  { %v1371_v20 = vsub.f32 1.5, %v1370_v44 }
 0xbef   :  { %v1703_v22 = vpop.eup %1702 }
 0xbf0   :  { %v1372_v24 = vmul.f32 %v1701_v15, %v1371_v20  ;;  %v1378_v25 = vmul.f32 %v1703_v22, %v1366_v16  ;;  %vm1384_vm10 = vweird.f32 %v1703_v22 }
 0xbf1   :  { %vm1385_vm12 = vmor %vm1383_vm11, %vm1384_vm10 }
 0xbf2   :  { %v1379_v28 = vmul.f32 %v1703_v22, %v1378_v25  ;;  %v1376_v29 = vsel %vm1375_vm9, %v1701_v15, %v1372_v24 }
 0xbf3   :  { %v1387_v34 = vmul.f32 %v1376_v29, %v1353_v26 }
 0xbf4   :  { %v1380_v30 = vmul.f32 0.5, %v1379_v28 }
 0xbf5   :  { %v1390_v39 = vmul.f32 %v1389_v10, %v1387_v34 }
 0xbf6   :  { %v1381_v33 = vsub.f32 1.5, %v1380_v30 }
 0xbf7   :  { %v1393_v41 = vadd.f32 %v1392_v38, %v1390_v39 }
 0xbf8   :  { %v1382_v2 = vmul.f32 %v1703_v22, %v1381_v33 }
 0xbfa   :  { %v1386_v37 = vsel %vm1385_vm12, %v1703_v22, %v1382_v2 }
 0xbfb   :  { %v1388_v23 = vmul.f32 %v1386_v37, %v1354_v31 }
 0xbfd   :  { %v1391_v40 = vmul.f32 %v1389_v10, %v1388_v23 }
 0xbff   :  { %v1394_v45 = vadd.f32 %v1392_v38, %v1391_v40 }
 0xc01   :  { %v1395_v35 = vpack.c.bf16 %v1394_v45, %v1393_v41 }
 0xc03   :  { %1546 = vmatmul.msk.bf16.vlgmr.msrb.gmra.mxu0 %vm116_vm0, %v1395_v35 }
 0xc80   :  { %v1421_v47 = vpop.f32.mrf.mxu0 }
 0xc81   :  { %v1422_v49 = vadd.f32 %v1421_v47, %v1396_v48 }
 0xc83   :  { %v1426_v52 = vmax.f32 %v1422_v49, 0.0 }
 0xc88   :  { %v1423_v50 = vpop.f32.mrf.mxu0 }
 0xc89   :  { %v1424_v51 = vadd.f32 %v1423_v50, %v1396_v48 }
 0xc8b   :  { %v1427_v53 = vmax.f32 %v1424_v51, 0.0 }
 0xc8d   :  { %v1428_v54 = vpack.c.bf16 %v1427_v53, %v1426_v52 }
 0xc8f   :  { %1563 = vmatmul.msk.bf16.vlgmr.msrb.gmra.mxu1 %vm1453_vm13, %v1428_v54 }
 0xd0c   :  { %v1466_v56 = vpop.f32.mrf.mxu1 }
 0xd0d   :  { %v1471_v58 = vadd.f32 %v1466_v56, %v2256_v36 }
 0xd0f   :  { %v1474_v59 = vadd.f32 %v1473_v55, %v1471_v58 }
 0xd11   :  { %1476 = vst.msk [vmem:[%s2317_s7] sm:$0xff] %vm116_vm0, %v1474_v59 }
 0xd14   :  { %v1468_v60 = vpop.f32.mrf.mxu1 }
 0xd15   :  { %v1472_v26 = vadd.f32 %v1468_v60, %v2261_v57 }
 0xd17   :  { %v1475_v63 = vadd.f32 %v1473_v55, %v1472_v26 }
 0xd19   :  { %1477 = vst.msk [vmem:[%s2317_s7 + $0x8] sm:$0xff] %vm116_vm0, %v1475_v63 }
 0xd1a   :  { %1482 = vsyncpa [#allocation3], 1 }
 0xd1b   :  { %1483 = vsyncpa [#allocation5], 1 }
 0xd1c   :  { %1484 = vsyncpa [#allocation8], 1 }

</bundles_post_ra>
